<compile_context>
chip_gen: v7x
topology: tpu7x:2x2x1
jax: 0.10.0
libtpu: 0.0.40
codegen_flags: <defaults>
</compile_context>

<pallas_src>
import math

import jax
import jax.numpy as jnp
from jax.experimental import pallas as pl
from jax.experimental.pallas import tpu as pltpu

# ----------------------------- model hyper-params -----------------------------
T       = 8    # sequence length
F_FIX   = 8    # fix_in_features
D_ATT   = 16   # att_in_features
NHEAD   = 2    # nhead
N_OBJ   = 8    # attention "objects" per sample
H_GRU   = 32   # query_gru_features
Q_HID   = 32   # query_hidden_features

A_TOT   = D_ATT * NHEAD            # att_in_features * nhead        = 32
U_GRU   = F_FIX + 2 * A_TOT        # GRUCell input size             = 72
U_HID   = H_GRU + F_FIX + A_TOT    # q_hidden input size            = 72

INV_SQRT_D = 1.0 / math.sqrt(D_ATT)

# packed-layout constants (all row offsets / extents are multiples of 8)
G_IN    = H_GRU + U_GRU + 8        # fused GRU input width  [h|fix|att|q|1,0..0] = 112
V_IN    = U_HID + 8                # q_hidden input width   [h|fix|att|1,0..0]   = 80
QH_OFF  = G_IN                     # 112
WQ_OFF  = QH_OFF + V_IN            # 192
W_ROWS  = WQ_OFF + Q_HID           # 224
W_COLS  = 4 * H_GRU                # 128
OUT_W   = H_GRU + A_TOT            # 64  (>= A_TOT + NHEAD*N_OBJ = 48)
X_ROWS  = T * N_OBJ + T            # 72


# --------------------------------- kernel ------------------------------------
def attention_kernel(x_ref, w_ref, s_ref, out_ref):
    f32 = jnp.float32

    # ---- one-time loads: weights stay resident across all T steps ----
    w_gru = w_ref[0:G_IN, :]                          # (112, 128)
    w_qh  = w_ref[QH_OFF:QH_OFF + V_IN, 0:Q_HID]      # (80, 32)
    w_q   = w_ref[WQ_OFF:WQ_OFF + Q_HID, 0:A_TOT]     # (32, 32)
    x_fix = x_ref[T * N_OBJ:T * N_OBJ + T, 0:F_FIX]   # (T, F_FIX)

    # constant "bias lane" block: [1, 0, ..., 0] (keeps K a multiple of 8)
    e0 = (jax.lax.broadcasted_iota(jnp.int32, (1, 8), 1) == 0).astype(f32)

    out_ref[...] = jnp.zeros_like(out_ref)            # deterministic padding lanes

    # recurrent state lives in registers across the unrolled loop
    h = s_ref[0:1, :]                                 # (1, H_GRU)
    q = s_ref[1:2, :]                                 # (1, A_TOT)

    for t in range(T):                                # static, fully unrolled (T = 8)
        att_t = x_ref[t * N_OBJ:(t + 1) * N_OBJ, :]   # (N_OBJ, D_ATT)
        fix_t = x_fix[t:t + 1, :]                     # (1, F_FIX)

        # ---- multi-head attention (heads stacked on sublanes) ----
        q_heads = jnp.concatenate(
            [q[:, hd * D_ATT:(hd + 1) * D_ATT] for hd in range(NHEAD)], axis=0)
        s = jax.lax.dot_general(
            q_heads, att_t, (((1,), (1,)), ((), ())),
            preferred_element_type=f32) * INV_SQRT_D              # (NHEAD, N_OBJ)
        s = s - jnp.max(s, axis=1, keepdims=True)
        e = jnp.exp(s)
        w = e / jnp.sum(e, axis=1, keepdims=True)                 # exact softmax
        att_heads = jnp.dot(w, att_t, preferred_element_type=f32)  # (NHEAD, D_ATT)
        att_vec = jnp.concatenate(
            [att_heads[hd:hd + 1, :] for hd in range(NHEAD)], axis=1)  # (1, A_TOT)

        fa = jnp.concatenate([fix_t, att_vec], axis=1)            # (1, 40) shared

        # ---- fused, bias-folded GRU cell: one (1,112)@(112,128) MXU push ----
        #   g[:, 0:64]   = gi_rz + gh_rz (+ biases)   -> r | z
        #   g[:, 64:96]  = gi_n (+ b_in)
        #   g[:, 96:128] = gh_n (+ b_hn)
        g_in = jnp.concatenate([h, fa, q, e0], axis=1)            # (1, G_IN)
        g = jnp.dot(g_in, w_gru, preferred_element_type=f32)      # (1, 4*H_GRU)
        rz = jax.nn.sigmoid(g[:, 0:2 * H_GRU])                    # one 64-lane EUP push
        r = rz[:, 0:H_GRU]
        z = rz[:, H_GRU:2 * H_GRU]
        n = jnp.tanh(g[:, 2 * H_GRU:3 * H_GRU] + r * g[:, 3 * H_GRU:4 * H_GRU])
        h = (1.0 - z) * n + z * h                                 # (1, H_GRU)

        # ---- query head: relu(linear, bias folded) @ weight_q ----
        v_in = jnp.concatenate([h, fa, e0], axis=1)               # (1, V_IN)
        hid = jax.nn.relu(jnp.dot(v_in, w_qh, preferred_element_type=f32))
        q = jnp.dot(hid, w_q, preferred_element_type=f32)         # (1, A_TOT)

        # ---- stream per-step outputs straight to VMEM (off the recurrence) ----
        out_ref[t:t + 1, 0:A_TOT] = att_vec
        out_ref[t:t + 1, A_TOT:A_TOT + NHEAD * N_OBJ] = jnp.concatenate(
            [w[hd:hd + 1, :] for hd in range(NHEAD)], axis=1)

    # final recurrent state in the last row of the output slab
    out_ref[T:T + 1, 0:H_GRU] = h
    out_ref[T:T + 1, H_GRU:H_GRU + A_TOT] = q


# ----------------------------- weight packing ---------------------------------
def pack_weights(params):
    """Packs all weights/biases into one (W_ROWS, 128) slab (done once)."""
    wih_T, bih, whh_T, bhh, wqh_T, bqh, wq = params
    H = H_GRU
    f32 = jnp.float32

    # fused / bias-folded GRU weight; g_in layout: [h(32)|fix(8)|att(32)|q(32)|1,0..0(8)]
    w_gru = jnp.zeros((G_IN, 4 * H), f32)
    w_gru = w_gru.at[0:H, 0:2 * H].set(whh_T[:, 0:2 * H])            # gh_r, gh_z
    w_gru = w_gru.at[0:H, 3 * H:4 * H].set(whh_T[:, 2 * H:3 * H])    # gh_n
    w_gru = w_gru.at[H:H + U_GRU, 0:2 * H].set(wih_T[:, 0:2 * H])    # gi_r, gi_z
    w_gru = w_gru.at[H:H + U_GRU, 2 * H:3 * H].set(wih_T[:, 2 * H:3 * H])  # gi_n
    w_gru = w_gru.at[H + U_GRU, 0:2 * H].set(bih[0:2 * H] + bhh[0:2 * H])
    w_gru = w_gru.at[H + U_GRU, 2 * H:3 * H].set(bih[2 * H:3 * H])
    w_gru = w_gru.at[H + U_GRU, 3 * H:4 * H].set(bhh[2 * H:3 * H])

    # bias-folded q_hidden weight; v_in layout: [h(32)|fix(8)|att(32)|1,0..0(8)]
    w_qh = jnp.zeros((V_IN, Q_HID), f32)
    w_qh = w_qh.at[0:U_HID, :].set(wqh_T)
    w_qh = w_qh.at[U_HID, :].set(bqh)

    w_pack = jnp.zeros((W_ROWS, W_COLS), f32)
    w_pack = w_pack.at[0:G_IN, :].set(w_gru)
    w_pack = w_pack.at[QH_OFF:QH_OFF + V_IN, 0:Q_HID].set(w_qh)
    w_pack = w_pack.at[WQ_OFF:WQ_OFF + Q_HID, 0:A_TOT].set(wq)
    return w_pack


# --------------------------------- wrapper -----------------------------------
@jax.jit
def attention_forward(x_fix, x_att, w_pack, q_gru_0, query_0):
    """Eval-mode forward of Attention.  Returns (pred, attw, q_gru_n, query_n)."""
    # pack per-call data: x_att rows then x_fix rows (lane-padded to D_ATT)
    x_pack = jnp.zeros((X_ROWS, D_ATT), jnp.float32)
    x_pack = x_pack.at[0:T * N_OBJ, :].set(x_att.reshape(T * N_OBJ, D_ATT))
    x_pack = x_pack.at[T * N_OBJ:, 0:F_FIX].set(x_fix)
    # initial state (H_GRU == A_TOT == 32 for this configuration)
    s_pack = jnp.stack([q_gru_0, query_0], axis=0)                 # (2, 32)

    vm = pl.BlockSpec(memory_space=pltpu.MemorySpace.VMEM)
    out = pl.pallas_call(
        attention_kernel,
        out_shape=jax.ShapeDtypeStruct((T + 1, OUT_W), jnp.float32),
        in_specs=[vm, vm, vm],
        out_specs=vm,
    )(x_pack, w_pack, s_pack)

    att_a = out[0:T, 0:A_TOT]
    attw = out[0:T, A_TOT:A_TOT + NHEAD * N_OBJ].reshape(T, NHEAD, N_OBJ)
    h_n = out[T, 0:H_GRU]
    q_n = out[T, H_GRU:H_GRU + A_TOT]
    pred = jnp.concatenate([x_fix, att_a], axis=-1)     # torch.cat([x_fix, att_a], -1)
    return pred, attw, h_n, q_n


# ----------------------------- pure-JAX reference -----------------------------
def attention_ref(x_fix, x_att, params, q_gru_0, query_0):
    """Faithful per-step reference, f32 (Precision.HIGHEST) matmuls."""
    wih_T, bih, whh_T, bhh, wqh_T, bqh, wq = params
    hp = jax.lax.Precision.HIGHEST
    h = q_gru_0
    query = query_0
    attws, atts = [], []
    for t in range(T):
        att_s = x_att[t]
        fix_s = x_fix[t]
        scores = jnp.dot(query.reshape(NHEAD, D_ATT), att_s.T, precision=hp) * INV_SQRT_D
        attw = jax.nn.softmax(scores, axis=1)
        att_vec = jnp.dot(attw, att_s, precision=hp).reshape(-1)
        u = jnp.concatenate([fix_s, att_vec, query])
        gi = jnp.dot(u, wih_T, precision=hp) + bih
        gh = jnp.dot(h, whh_T, precision=hp) + bhh
        r = jax.nn.sigmoid(gi[:H_GRU] + gh[:H_GRU])
        z = jax.nn.sigmoid(gi[H_GRU:2 * H_GRU] + gh[H_GRU:2 * H_GRU])
        n = jnp.tanh(gi[2 * H_GRU:] + r * gh[2 * H_GRU:])
        h = (1.0 - z) * n + z * h
        hid = jax.nn.relu(
            jnp.dot(jnp.concatenate([h, fix_s, att_vec]), wqh_T, precision=hp) + bqh)
        query = jnp.dot(hid, wq, precision=hp)
        attws.append(attw)
        atts.append(att_vec)
    att_a = jnp.stack(atts)
    return jnp.concatenate([x_fix, att_a], -1), jnp.stack(attws), h, query


# ----------------------------------- main -------------------------------------
def _xavier(key, shape_in_out):
    fan_in, fan_out = shape_in_out
    bound = math.sqrt(6.0 / (fan_in + fan_out))
    return jax.random.uniform(key, (fan_in, fan_out), jnp.float32, -bound, bound)


if __name__ == "__main__":
    key = jax.random.PRNGKey(0)
    ks = jax.random.split(key, 8)

    # GRUCell params (uniform(-1/sqrt(H), 1/sqrt(H)), torch layout pre-transposed).
    bg = 1.0 / math.sqrt(H_GRU)
    wih_T = jax.random.uniform(ks[0], (U_GRU, 3 * H_GRU), jnp.float32, -bg, bg)
    whh_T = jax.random.uniform(ks[1], (H_GRU, 3 * H_GRU), jnp.float32, -bg, bg)
    bih   = jax.random.uniform(ks[2], (3 * H_GRU,), jnp.float32, -bg, bg)
    bhh   = jax.random.uniform(ks[3], (3 * H_GRU,), jnp.float32, -bg, bg)
    # q_hidden: Linear(U_HID -> Q_HID), xavier weights, zero bias (stored transposed).
    wqh_T = _xavier(ks[4], (U_HID, Q_HID))
    bqh   = jnp.zeros((Q_HID,), jnp.float32)
    # weight_q: (Q_HID, A_TOT), xavier.
    wq    = _xavier(ks[5], (Q_HID, A_TOT))

    params = (wih_T, bih, whh_T, bhh, wqh_T, bqh, wq)
    w_pack = pack_weights(params)          # packed once, reused every call

    # Inputs.
    x_fix = jax.random.normal(ks[6], (T, F_FIX), jnp.float32)
    x_att = jax.random.normal(ks[7], (T, N_OBJ, D_ATT), jnp.float32)

    # Default initial states (as in the PyTorch module): zeros hidden, ones query.
    q_gru_0 = jnp.zeros((H_GRU,), jnp.float32)
    query_0 = jnp.ones((A_TOT,), jnp.float32)

    pred, attw, h_n, q_n = attention_forward(x_fix, x_att, w_pack, q_gru_0, query_0)
    jax.block_until_ready((pred, attw, h_n, q_n))

    pred_r, attw_r, h_r, q_r = attention_ref(x_fix, x_att, params, q_gru_0, query_0)

    # Tolerance bounds MXU / default-precision (bf16-pass) matmul rounding
    # compounded across the 8-step recurrence; with exact f32 math both sides
    # agree to ~1e-5.
    TOL = dict(rtol=2e-2, atol=2e-2)
    assert jnp.allclose(pred, pred_r, **TOL), "pred mismatch"
    assert jnp.allclose(attw, attw_r, **TOL), "attw mismatch"
    assert jnp.allclose(h_n, h_r, **TOL), "q_gru_n mismatch"
    assert jnp.allclose(q_n, q_r, **TOL), "query_n mismatch"

    print("KERNEL_OK")
</pallas_src>

<mosaic_0001>
module attributes {stable_mosaic.version = 11 : i64} {
  func.func @attention_kernel(%arg0: memref<72x16xf32, #tpu.memory_space<vmem>>, %arg1: memref<224x128xf32, #tpu.memory_space<vmem>>, %arg2: memref<2x32xf32, #tpu.memory_space<vmem>>, %arg3: memref<9x64xf32, #tpu.memory_space<vmem>>) attributes {dimension_semantics = [], scalar_prefetch = 0 : i64, scratch_operands = 0 : i64, tpu.core_type = #tpu.core_type<tc>} {
    %c0 = arith.constant 0 : index
    %c0_0 = arith.constant 0 : index
    %0 = vector.load %arg1[%c0, %c0_0] : memref<224x128xf32, #tpu.memory_space<vmem>>, vector<112x128xf32>
    %c112 = arith.constant 112 : index
    %c0_1 = arith.constant 0 : index
    %1 = vector.load %arg1[%c112, %c0_1] : memref<224x128xf32, #tpu.memory_space<vmem>>, vector<80x32xf32>
    %c192 = arith.constant 192 : index
    %c0_2 = arith.constant 0 : index
    %2 = vector.load %arg1[%c192, %c0_2] : memref<224x128xf32, #tpu.memory_space<vmem>>, vector<32x32xf32>
    %c64 = arith.constant 64 : index
    %c0_3 = arith.constant 0 : index
    %3 = vector.load %arg0[%c64, %c0_3] : memref<72x16xf32, #tpu.memory_space<vmem>>, vector<8x8xf32>
    %4 = tpu.iota {dimensions = array<i32: 1>} : vector<1x8xi32>
    %c0_i32 = arith.constant 0 : i32
    %5 = vector.broadcast %c0_i32 : i32 to vector<1x8xi32>
    %6 = arith.cmpi eq, %4, %5 : vector<1x8xi32>
    %7 = arith.extui %6 : vector<1x8xi1> to vector<1x8xi32>
    %8 = arith.sitofp %7 : vector<1x8xi32> to vector<1x8xf32>
    %cst = arith.constant 0.000000e+00 : f32
    %9 = vector.broadcast %cst : f32 to vector<9x64xf32>
    %c0_4 = arith.constant 0 : index
    %c0_5 = arith.constant 0 : index
    %10 = vector.load %arg3[%c0_4, %c0_5] : memref<9x64xf32, #tpu.memory_space<vmem>>, vector<9x64xf32>
    tpu.vector_store %arg3[%c0_4, %c0_5], %9 {strides = array<i32>} : memref<9x64xf32, #tpu.memory_space<vmem>>, vector<9x64xf32>,
    %c0_6 = arith.constant 0 : index
    %c0_7 = arith.constant 0 : index
    %11 = vector.load %arg2[%c0_6, %c0_7] : memref<2x32xf32, #tpu.memory_space<vmem>>, vector<1x32xf32>
    %c1 = arith.constant 1 : index
    %c0_8 = arith.constant 0 : index
    %12 = vector.load %arg2[%c1, %c0_8] : memref<2x32xf32, #tpu.memory_space<vmem>>, vector<1x32xf32>
    %c0_9 = arith.constant 0 : index
    %c0_10 = arith.constant 0 : index
    %13 = vector.load %arg0[%c0_9, %c0_10] : memref<72x16xf32, #tpu.memory_space<vmem>>, vector<8x16xf32>
    %14 = vector.extract_strided_slice %3 {offsets = [0, 0], sizes = [1, 8], strides = [1, 1]} : vector<8x8xf32> to vector<1x8xf32>
    %15 = vector.extract_strided_slice %12 {offsets = [0, 0], sizes = [1, 16], strides = [1, 1]} : vector<1x32xf32> to vector<1x16xf32>
    %16 = vector.extract_strided_slice %12 {offsets = [0, 16], sizes = [1, 16], strides = [1, 1]} : vector<1x32xf32> to vector<1x16xf32>
    %17 = tpu.concatenate %15, %16 in 0 : vector<1x16xf32>, vector<1x16xf32> -> vector<2x16xf32>
    %cst_11 = arith.constant dense<0.000000e+00> : vector<2x8xf32>
    %18 = tpu.matmul %17, %13, %cst_11 {dimension_numbers = #tpu.dot_dimension_numbers<[1], [1], [0], [0], [0, 0, 1, 0], [], []>} : vector<2x16xf32>, vector<8x16xf32>, vector<2x8xf32> -> vector<2x8xf32>
    %cst_12 = arith.constant 2.500000e-01 : f32
    %19 = vector.broadcast %cst_12 : f32 to vector<2x8xf32>
    %20 = arith.mulf %18, %19 : vector<2x8xf32>
    %cst_13 = arith.constant dense<0xFF800000> : vector<2xf32>
    %21 = vector.multi_reduction <maximumf>, %20, %cst_13 [1] : vector<2x8xf32> to vector<2xf32>
    %22 = vector.shape_cast %21 : vector<2xf32> to vector<2x1xf32>
    %23 = vector.broadcast %22 : vector<2x1xf32> to vector<2x8xf32>
    %24 = arith.subf %20, %23 : vector<2x8xf32>
    %25 = math.exp %24 : vector<2x8xf32>
    %cst_14 = arith.constant dense<0.000000e+00> : vector<2xf32>
    %26 = vector.multi_reduction <add>, %25, %cst_14 [1] : vector<2x8xf32> to vector<2xf32>
    %27 = vector.shape_cast %26 : vector<2xf32> to vector<2x1xf32>
    %28 = vector.broadcast %27 : vector<2x1xf32> to vector<2x8xf32>
    %29 = arith.divf %25, %28 : vector<2x8xf32>
    %cst_15 = arith.constant dense<0.000000e+00> : vector<2x16xf32>
    %30 = tpu.matmul %29, %13, %cst_15 {dimension_numbers = #tpu.dot_dimension_numbers<[1], [0], [0], [1], [0, 0, 1, 1], [], []>} : vector<2x8xf32>, vector<8x16xf32>, vector<2x16xf32> -> vector<2x16xf32>
    %31 = vector.extract_strided_slice %30 {offsets = [0, 0], sizes = [1, 16], strides = [1, 1]} : vector<2x16xf32> to vector<1x16xf32>
    %32 = vector.extract_strided_slice %30 {offsets = [1, 0], sizes = [1, 16], strides = [1, 1]} : vector<2x16xf32> to vector<1x16xf32>
    %33 = tpu.concatenate %31, %32 in 1 : vector<1x16xf32>, vector<1x16xf32> -> vector<1x32xf32>
    %34 = tpu.concatenate %14, %33 in 1 : vector<1x8xf32>, vector<1x32xf32> -> vector<1x40xf32>
    %35 = tpu.concatenate %11, %34, %12, %8 in 1 : vector<1x32xf32>, vector<1x40xf32>, vector<1x32xf32>, vector<1x8xf32> -> vector<1x112xf32>
    %cst_16 = arith.constant dense<0.000000e+00> : vector<1x128xf32>
    %36 = tpu.matmul %35, %0, %cst_16 {dimension_numbers = #tpu.dot_dimension_numbers<[1], [0], [0], [1], [0, 0, 1, 1], [], []>} : vector<1x112xf32>, vector<112x128xf32>, vector<1x128xf32> -> vector<1x128xf32>
    %37 = vector.extract_strided_slice %36 {offsets = [0, 0], sizes = [1, 64], strides = [1, 1]} : vector<1x128xf32> to vector<1x64xf32>
    %38 = arith.negf %37 : vector<1x64xf32>
    %39 = math.exp %38 : vector<1x64xf32>
    %cst_17 = arith.constant 1.000000e+00 : f32
    %40 = vector.broadcast %cst_17 : f32 to vector<1x64xf32>
    %41 = arith.addf %40, %39 : vector<1x64xf32>
    %42 = arith.divf %40, %41 : vector<1x64xf32>
    %43 = vector.extract_strided_slice %42 {offsets = [0, 0], sizes = [1, 32], strides = [1, 1]} : vector<1x64xf32> to vector<1x32xf32>
    %44 = vector.extract_strided_slice %42 {offsets = [0, 32], sizes = [1, 32], strides = [1, 1]} : vector<1x64xf32> to vector<1x32xf32>
    %45 = vector.extract_strided_slice %36 {offsets = [0, 64], sizes = [1, 32], strides = [1, 1]} : vector<1x128xf32> to vector<1x32xf32>
    %46 = vector.extract_strided_slice %36 {offsets = [0, 96], sizes = [1, 32], strides = [1, 1]} : vector<1x128xf32> to vector<1x32xf32>
    %47 = arith.mulf %43, %46 : vector<1x32xf32>
    %48 = arith.addf %45, %47 : vector<1x32xf32>
    %49 = math.tanh %48 : vector<1x32xf32>
    %cst_18 = arith.constant 1.000000e+00 : f32
    %50 = vector.broadcast %cst_18 : f32 to vector<1x32xf32>
    %51 = arith.subf %50, %44 : vector<1x32xf32>
    %52 = arith.mulf %51, %49 : vector<1x32xf32>
    %53 = arith.mulf %44, %11 : vector<1x32xf32>
    %54 = arith.addf %52, %53 : vector<1x32xf32>
    %55 = tpu.concatenate %54, %34, %8 in 1 : vector<1x32xf32>, vector<1x40xf32>, vector<1x8xf32> -> vector<1x80xf32>
    %cst_19 = arith.constant dense<0.000000e+00> : vector<1x32xf32>
    %56 = tpu.matmul %55, %1, %cst_19 {dimension_numbers = #tpu.dot_dimension_numbers<[1], [0], [0], [1], [0, 0, 1, 1], [], []>} : vector<1x80xf32>, vector<80x32xf32>, vector<1x32xf32> -> vector<1x32xf32>
    %cst_20 = arith.constant 0.000000e+00 : f32
    %57 = vector.broadcast %cst_20 : f32 to vector<1x32xf32>
    %58 = arith.maximumf %56, %57 : vector<1x32xf32>
    %cst_21 = arith.constant dense<0.000000e+00> : vector<1x32xf32>
    %59 = tpu.matmul %58, %2, %cst_21 {dimension_numbers = #tpu.dot_dimension_numbers<[1], [0], [0], [1], [0, 0, 1, 1], [], []>} : vector<1x32xf32>, vector<32x32xf32>, vector<1x32xf32> -> vector<1x32xf32>
    %c0_22 = arith.constant 0 : index
    %c0_23 = arith.constant 0 : index
    %60 = vector.load %arg3[%c0_22, %c0_23] : memref<9x64xf32, #tpu.memory_space<vmem>>, vector<1x32xf32>
    tpu.vector_store %arg3[%c0_22, %c0_23], %33 {strides = array<i32>} : memref<9x64xf32, #tpu.memory_space<vmem>>, vector<1x32xf32>,
    %61 = vector.extract_strided_slice %29 {offsets = [0, 0], sizes = [1, 8], strides = [1, 1]} : vector<2x8xf32> to vector<1x8xf32>
    %62 = vector.extract_strided_slice %29 {offsets = [1, 0], sizes = [1, 8], strides = [1, 1]} : vector<2x8xf32> to vector<1x8xf32>
    %63 = tpu.concatenate %61, %62 in 1 : vector<1x8xf32>, vector<1x8xf32> -> vector<1x16xf32>
    %c0_24 = arith.constant 0 : index
    %c32 = arith.constant 32 : index
    %64 = vector.load %arg3[%c0_24, %c32] : memref<9x64xf32, #tpu.memory_space<vmem>>, vector<1x16xf32>
    tpu.vector_store %arg3[%c0_24, %c32], %63 {strides = array<i32>} : memref<9x64xf32, #tpu.memory_space<vmem>>, vector<1x16xf32>,
    %c8 = arith.constant 8 : index
    %c0_25 = arith.constant 0 : index
    %65 = vector.load %arg0[%c8, %c0_25] : memref<72x16xf32, #tpu.memory_space<vmem>>, vector<8x16xf32>
    %66 = vector.extract_strided_slice %3 {offsets = [1, 0], sizes = [1, 8], strides = [1, 1]} : vector<8x8xf32> to vector<1x8xf32>
    %67 = vector.extract_strided_slice %59 {offsets = [0, 0], sizes = [1, 16], strides = [1, 1]} : vector<1x32xf32> to vector<1x16xf32>
    %68 = vector.extract_strided_slice %59 {offsets = [0, 16], sizes = [1, 16], strides = [1, 1]} : vector<1x32xf32> to vector<1x16xf32>
    %69 = tpu.concatenate %67, %68 in 0 : vector<1x16xf32>, vector<1x16xf32> -> vector<2x16xf32>
    %cst_26 = arith.constant dense<0.000000e+00> : vector<2x8xf32>
    %70 = tpu.matmul %69, %65, %cst_26 {dimension_numbers = #tpu.dot_dimension_numbers<[1], [1], [0], [0], [0, 0, 1, 0], [], []>} : vector<2x16xf32>, vector<8x16xf32>, vector<2x8xf32> -> vector<2x8xf32>
    %cst_27 = arith.constant 2.500000e-01 : f32
    %71 = vector.broadcast %cst_27 : f32 to vector<2x8xf32>
    %72 = arith.mulf %70, %71 : vector<2x8xf32>
    %cst_28 = arith.constant dense<0xFF800000> : vector<2xf32>
    %73 = vector.multi_reduction <maximumf>, %72, %cst_28 [1] : vector<2x8xf32> to vector<2xf32>
    %74 = vector.shape_cast %73 : vector<2xf32> to vector<2x1xf32>
    %75 = vector.broadcast %74 : vector<2x1xf32> to vector<2x8xf32>
    %76 = arith.subf %72, %75 : vector<2x8xf32>
    %77 = math.exp %76 : vector<2x8xf32>
    %cst_29 = arith.constant dense<0.000000e+00> : vector<2xf32>
    %78 = vector.multi_reduction <add>, %77, %cst_29 [1] : vector<2x8xf32> to vector<2xf32>
    %79 = vector.shape_cast %78 : vector<2xf32> to vector<2x1xf32>
    %80 = vector.broadcast %79 : vector<2x1xf32> to vector<2x8xf32>
    %81 = arith.divf %77, %80 : vector<2x8xf32>
    %cst_30 = arith.constant dense<0.000000e+00> : vector<2x16xf32>
    %82 = tpu.matmul %81, %65, %cst_30 {dimension_numbers = #tpu.dot_dimension_numbers<[1], [0], [0], [1], [0, 0, 1, 1], [], []>} : vector<2x8xf32>, vector<8x16xf32>, vector<2x16xf32> -> vector<2x16xf32>
    %83 = vector.extract_strided_slice %82 {offsets = [0, 0], sizes = [1, 16], strides = [1, 1]} : vector<2x16xf32> to vector<1x16xf32>
    %84 = vector.extract_strided_slice %82 {offsets = [1, 0], sizes = [1, 16], strides = [1, 1]} : vector<2x16xf32> to vector<1x16xf32>
    %85 = tpu.concatenate %83, %84 in 1 : vector<1x16xf32>, vector<1x16xf32> -> vector<1x32xf32>
    %86 = tpu.concatenate %66, %85 in 1 : vector<1x8xf32>, vector<1x32xf32> -> vector<1x40xf32>
    %87 = tpu.concatenate %54, %86, %59, %8 in 1 : vector<1x32xf32>, vector<1x40xf32>, vector<1x32xf32>, vector<1x8xf32> -> vector<1x112xf32>
    %cst_31 = arith.constant dense<0.000000e+00> : vector<1x128xf32>
    %88 = tpu.matmul %87, %0, %cst_31 {dimension_numbers = #tpu.dot_dimension_numbers<[1], [0], [0], [1], [0, 0, 1, 1], [], []>} : vector<1x112xf32>, vector<112x128xf32>, vector<1x128xf32> -> vector<1x128xf32>
    %89 = vector.extract_strided_slice %88 {offsets = [0, 0], sizes = [1, 64], strides = [1, 1]} : vector<1x128xf32> to vector<1x64xf32>
    %90 = arith.negf %89 : vector<1x64xf32>
    %91 = math.exp %90 : vector<1x64xf32>
    %cst_32 = arith.constant 1.000000e+00 : f32
    %92 = vector.broadcast %cst_32 : f32 to vector<1x64xf32>
    %93 = arith.addf %92, %91 : vector<1x64xf32>
    %94 = arith.divf %92, %93 : vector<1x64xf32>
    %95 = vector.extract_strided_slice %94 {offsets = [0, 0], sizes = [1, 32], strides = [1, 1]} : vector<1x64xf32> to vector<1x32xf32>
    %96 = vector.extract_strided_slice %94 {offsets = [0, 32], sizes = [1, 32], strides = [1, 1]} : vector<1x64xf32> to vector<1x32xf32>
    %97 = vector.extract_strided_slice %88 {offsets = [0, 64], sizes = [1, 32], strides = [1, 1]} : vector<1x128xf32> to vector<1x32xf32>
    %98 = vector.extract_strided_slice %88 {offsets = [0, 96], sizes = [1, 32], strides = [1, 1]} : vector<1x128xf32> to vector<1x32xf32>
    %99 = arith.mulf %95, %98 : vector<1x32xf32>
    %100 = arith.addf %97, %99 : vector<1x32xf32>
    %101 = math.tanh %100 : vector<1x32xf32>
    %cst_33 = arith.constant 1.000000e+00 : f32
    %102 = vector.broadcast %cst_33 : f32 to vector<1x32xf32>
    %103 = arith.subf %102, %96 : vector<1x32xf32>
    %104 = arith.mulf %103, %101 : vector<1x32xf32>
    %105 = arith.mulf %96, %54 : vector<1x32xf32>
    %106 = arith.addf %104, %105 : vector<1x32xf32>
    %107 = tpu.concatenate %106, %86, %8 in 1 : vector<1x32xf32>, vector<1x40xf32>, vector<1x8xf32> -> vector<1x80xf32>
    %cst_34 = arith.constant dense<0.000000e+00> : vector<1x32xf32>
    %108 = tpu.matmul %107, %1, %cst_34 {dimension_numbers = #tpu.dot_dimension_numbers<[1], [0], [0], [1], [0, 0, 1, 1], [], []>} : vector<1x80xf32>, vector<80x32xf32>, vector<1x32xf32> -> vector<1x32xf32>
    %cst_35 = arith.constant 0.000000e+00 : f32
    %109 = vector.broadcast %cst_35 : f32 to vector<1x32xf32>
    %110 = arith.maximumf %108, %109 : vector<1x32xf32>
    %cst_36 = arith.constant dense<0.000000e+00> : vector<1x32xf32>
    %111 = tpu.matmul %110, %2, %cst_36 {dimension_numbers = #tpu.dot_dimension_numbers<[1], [0], [0], [1], [0, 0, 1, 1], [], []>} : vector<1x32xf32>, vector<32x32xf32>, vector<1x32xf32> -> vector<1x32xf32>
    %c1_37 = arith.constant 1 : index
    %c0_38 = arith.constant 0 : index
    %112 = vector.load %arg3[%c1_37, %c0_38] : memref<9x64xf32, #tpu.memory_space<vmem>>, vector<1x32xf32>
    tpu.vector_store %arg3[%c1_37, %c0_38], %85 {strides = array<i32>} : memref<9x64xf32, #tpu.memory_space<vmem>>, vector<1x32xf32>,
    %113 = vector.extract_strided_slice %81 {offsets = [0, 0], sizes = [1, 8], strides = [1, 1]} : vector<2x8xf32> to vector<1x8xf32>
    %114 = vector.extract_strided_slice %81 {offsets = [1, 0], sizes = [1, 8], strides = [1, 1]} : vector<2x8xf32> to vector<1x8xf32>
    %115 = tpu.concatenate %113, %114 in 1 : vector<1x8xf32>, vector<1x8xf32> -> vector<1x16xf32>
    %c1_39 = arith.constant 1 : index
    %c32_40 = arith.constant 32 : index
    %116 = vector.load %arg3[%c1_39, %c32_40] : memref<9x64xf32, #tpu.memory_space<vmem>>, vector<1x16xf32>
    tpu.vector_store %arg3[%c1_39, %c32_40], %115 {strides = array<i32>} : memref<9x64xf32, #tpu.memory_space<vmem>>, vector<1x16xf32>,
    %c16 = arith.constant 16 : index
    %c0_41 = arith.constant 0 : index
    %117 = vector.load %arg0[%c16, %c0_41] : memref<72x16xf32, #tpu.memory_space<vmem>>, vector<8x16xf32>
    %118 = vector.extract_strided_slice %3 {offsets = [2, 0], sizes = [1, 8], strides = [1, 1]} : vector<8x8xf32> to vector<1x8xf32>
    %119 = vector.extract_strided_slice %111 {offsets = [0, 0], sizes = [1, 16], strides = [1, 1]} : vector<1x32xf32> to vector<1x16xf32>
    %120 = vector.extract_strided_slice %111 {offsets = [0, 16], sizes = [1, 16], strides = [1, 1]} : vector<1x32xf32> to vector<1x16xf32>
    %121 = tpu.concatenate %119, %120 in 0 : vector<1x16xf32>, vector<1x16xf32> -> vector<2x16xf32>
    %cst_42 = arith.constant dense<0.000000e+00> : vector<2x8xf32>
    %122 = tpu.matmul %121, %117, %cst_42 {dimension_numbers = #tpu.dot_dimension_numbers<[1], [1], [0], [0], [0, 0, 1, 0], [], []>} : vector<2x16xf32>, vector<8x16xf32>, vector<2x8xf32> -> vector<2x8xf32>
    %cst_43 = arith.constant 2.500000e-01 : f32
    %123 = vector.broadcast %cst_43 : f32 to vector<2x8xf32>
    %124 = arith.mulf %122, %123 : vector<2x8xf32>
    %cst_44 = arith.constant dense<0xFF800000> : vector<2xf32>
    %125 = vector.multi_reduction <maximumf>, %124, %cst_44 [1] : vector<2x8xf32> to vector<2xf32>
    %126 = vector.shape_cast %125 : vector<2xf32> to vector<2x1xf32>
    %127 = vector.broadcast %126 : vector<2x1xf32> to vector<2x8xf32>
    %128 = arith.subf %124, %127 : vector<2x8xf32>
    %129 = math.exp %128 : vector<2x8xf32>
    %cst_45 = arith.constant dense<0.000000e+00> : vector<2xf32>
    %130 = vector.multi_reduction <add>, %129, %cst_45 [1] : vector<2x8xf32> to vector<2xf32>
    %131 = vector.shape_cast %130 : vector<2xf32> to vector<2x1xf32>
    %132 = vector.broadcast %131 : vector<2x1xf32> to vector<2x8xf32>
    %133 = arith.divf %129, %132 : vector<2x8xf32>
    %cst_46 = arith.constant dense<0.000000e+00> : vector<2x16xf32>
    %134 = tpu.matmul %133, %117, %cst_46 {dimension_numbers = #tpu.dot_dimension_numbers<[1], [0], [0], [1], [0, 0, 1, 1], [], []>} : vector<2x8xf32>, vector<8x16xf32>, vector<2x16xf32> -> vector<2x16xf32>
    %135 = vector.extract_strided_slice %134 {offsets = [0, 0], sizes = [1, 16], strides = [1, 1]} : vector<2x16xf32> to vector<1x16xf32>
    %136 = vector.extract_strided_slice %134 {offsets = [1, 0], sizes = [1, 16], strides = [1, 1]} : vector<2x16xf32> to vector<1x16xf32>
    %137 = tpu.concatenate %135, %136 in 1 : vector<1x16xf32>, vector<1x16xf32> -> vector<1x32xf32>
    %138 = tpu.concatenate %118, %137 in 1 : vector<1x8xf32>, vector<1x32xf32> -> vector<1x40xf32>
    %139 = tpu.concatenate %106, %138, %111, %8 in 1 : vector<1x32xf32>, vector<1x40xf32>, vector<1x32xf32>, vector<1x8xf32> -> vector<1x112xf32>
    %cst_47 = arith.constant dense<0.000000e+00> : vector<1x128xf32>
    %140 = tpu.matmul %139, %0, %cst_47 {dimension_numbers = #tpu.dot_dimension_numbers<[1], [0], [0], [1], [0, 0, 1, 1], [], []>} : vector<1x112xf32>, vector<112x128xf32>, vector<1x128xf32> -> vector<1x128xf32>
    %141 = vector.extract_strided_slice %140 {offsets = [0, 0], sizes = [1, 64], strides = [1, 1]} : vector<1x128xf32> to vector<1x64xf32>
    %142 = arith.negf %141 : vector<1x64xf32>
    %143 = math.exp %142 : vector<1x64xf32>
    %cst_48 = arith.constant 1.000000e+00 : f32
    %144 = vector.broadcast %cst_48 : f32 to vector<1x64xf32>
    %145 = arith.addf %144, %143 : vector<1x64xf32>
    %146 = arith.divf %144, %145 : vector<1x64xf32>
    %147 = vector.extract_strided_slice %146 {offsets = [0, 0], sizes = [1, 32], strides = [1, 1]} : vector<1x64xf32> to vector<1x32xf32>
    %148 = vector.extract_strided_slice %146 {offsets = [0, 32], sizes = [1, 32], strides = [1, 1]} : vector<1x64xf32> to vector<1x32xf32>
    %149 = vector.extract_strided_slice %140 {offsets = [0, 64], sizes = [1, 32], strides = [1, 1]} : vector<1x128xf32> to vector<1x32xf32>
    %150 = vector.extract_strided_slice %140 {offsets = [0, 96], sizes = [1, 32], strides = [1, 1]} : vector<1x128xf32> to vector<1x32xf32>
    %151 = arith.mulf %147, %150 : vector<1x32xf32>
    %152 = arith.addf %149, %151 : vector<1x32xf32>
    %153 = math.tanh %152 : vector<1x32xf32>
    %cst_49 = arith.constant 1.000000e+00 : f32
    %154 = vector.broadcast %cst_49 : f32 to vector<1x32xf32>
    %155 = arith.subf %154, %148 : vector<1x32xf32>
    %156 = arith.mulf %155, %153 : vector<1x32xf32>
    %157 = arith.mulf %148, %106 : vector<1x32xf32>
    %158 = arith.addf %156, %157 : vector<1x32xf32>
    %159 = tpu.concatenate %158, %138, %8 in 1 : vector<1x32xf32>, vector<1x40xf32>, vector<1x8xf32> -> vector<1x80xf32>
    %cst_50 = arith.constant dense<0.000000e+00> : vector<1x32xf32>
    %160 = tpu.matmul %159, %1, %cst_50 {dimension_numbers = #tpu.dot_dimension_numbers<[1], [0], [0], [1], [0, 0, 1, 1], [], []>} : vector<1x80xf32>, vector<80x32xf32>, vector<1x32xf32> -> vector<1x32xf32>
    %cst_51 = arith.constant 0.000000e+00 : f32
    %161 = vector.broadcast %cst_51 : f32 to vector<1x32xf32>
    %162 = arith.maximumf %160, %161 : vector<1x32xf32>
    %cst_52 = arith.constant dense<0.000000e+00> : vector<1x32xf32>
    %163 = tpu.matmul %162, %2, %cst_52 {dimension_numbers = #tpu.dot_dimension_numbers<[1], [0], [0], [1], [0, 0, 1, 1], [], []>} : vector<1x32xf32>, vector<32x32xf32>, vector<1x32xf32> -> vector<1x32xf32>
    %c2 = arith.constant 2 : index
    %c0_53 = arith.constant 0 : index
    %164 = vector.load %arg3[%c2, %c0_53] : memref<9x64xf32, #tpu.memory_space<vmem>>, vector<1x32xf32>
    tpu.vector_store %arg3[%c2, %c0_53], %137 {strides = array<i32>} : memref<9x64xf32, #tpu.memory_space<vmem>>, vector<1x32xf32>,
    %165 = vector.extract_strided_slice %133 {offsets = [0, 0], sizes = [1, 8], strides = [1, 1]} : vector<2x8xf32> to vector<1x8xf32>
    %166 = vector.extract_strided_slice %133 {offsets = [1, 0], sizes = [1, 8], strides = [1, 1]} : vector<2x8xf32> to vector<1x8xf32>
    %167 = tpu.concatenate %165, %166 in 1 : vector<1x8xf32>, vector<1x8xf32> -> vector<1x16xf32>
    %c2_54 = arith.constant 2 : index
    %c32_55 = arith.constant 32 : index
    %168 = vector.load %arg3[%c2_54, %c32_55] : memref<9x64xf32, #tpu.memory_space<vmem>>, vector<1x16xf32>
    tpu.vector_store %arg3[%c2_54, %c32_55], %167 {strides = array<i32>} : memref<9x64xf32, #tpu.memory_space<vmem>>, vector<1x16xf32>,
    %c24 = arith.constant 24 : index
    %c0_56 = arith.constant 0 : index
    %169 = vector.load %arg0[%c24, %c0_56] : memref<72x16xf32, #tpu.memory_space<vmem>>, vector<8x16xf32>
    %170 = vector.extract_strided_slice %3 {offsets = [3, 0], sizes = [1, 8], strides = [1, 1]} : vector<8x8xf32> to vector<1x8xf32>
    %171 = vector.extract_strided_slice %163 {offsets = [0, 0], sizes = [1, 16], strides = [1, 1]} : vector<1x32xf32> to vector<1x16xf32>
    %172 = vector.extract_strided_slice %163 {offsets = [0, 16], sizes = [1, 16], strides = [1, 1]} : vector<1x32xf32> to vector<1x16xf32>
    %173 = tpu.concatenate %171, %172 in 0 : vector<1x16xf32>, vector<1x16xf32> -> vector<2x16xf32>
    %cst_57 = arith.constant dense<0.000000e+00> : vector<2x8xf32>
    %174 = tpu.matmul %173, %169, %cst_57 {dimension_numbers = #tpu.dot_dimension_numbers<[1], [1], [0], [0], [0, 0, 1, 0], [], []>} : vector<2x16xf32>, vector<8x16xf32>, vector<2x8xf32> -> vector<2x8xf32>
    %cst_58 = arith.constant 2.500000e-01 : f32
    %175 = vector.broadcast %cst_58 : f32 to vector<2x8xf32>
    %176 = arith.mulf %174, %175 : vector<2x8xf32>
    %cst_59 = arith.constant dense<0xFF800000> : vector<2xf32>
    %177 = vector.multi_reduction <maximumf>, %176, %cst_59 [1] : vector<2x8xf32> to vector<2xf32>
    %178 = vector.shape_cast %177 : vector<2xf32> to vector<2x1xf32>
    %179 = vector.broadcast %178 : vector<2x1xf32> to vector<2x8xf32>
    %180 = arith.subf %176, %179 : vector<2x8xf32>
    %181 = math.exp %180 : vector<2x8xf32>
    %cst_60 = arith.constant dense<0.000000e+00> : vector<2xf32>
    %182 = vector.multi_reduction <add>, %181, %cst_60 [1] : vector<2x8xf32> to vector<2xf32>
    %183 = vector.shape_cast %182 : vector<2xf32> to vector<2x1xf32>
    %184 = vector.broadcast %183 : vector<2x1xf32> to vector<2x8xf32>
    %185 = arith.divf %181, %184 : vector<2x8xf32>
    %cst_61 = arith.constant dense<0.000000e+00> : vector<2x16xf32>
    %186 = tpu.matmul %185, %169, %cst_61 {dimension_numbers = #tpu.dot_dimension_numbers<[1], [0], [0], [1], [0, 0, 1, 1], [], []>} : vector<2x8xf32>, vector<8x16xf32>, vector<2x16xf32> -> vector<2x16xf32>
    %187 = vector.extract_strided_slice %186 {offsets = [0, 0], sizes = [1, 16], strides = [1, 1]} : vector<2x16xf32> to vector<1x16xf32>
    %188 = vector.extract_strided_slice %186 {offsets = [1, 0], sizes = [1, 16], strides = [1, 1]} : vector<2x16xf32> to vector<1x16xf32>
    %189 = tpu.concatenate %187, %188 in 1 : vector<1x16xf32>, vector<1x16xf32> -> vector<1x32xf32>
    %190 = tpu.concatenate %170, %189 in 1 : vector<1x8xf32>, vector<1x32xf32> -> vector<1x40xf32>
    %191 = tpu.concatenate %158, %190, %163, %8 in 1 : vector<1x32xf32>, vector<1x40xf32>, vector<1x32xf32>, vector<1x8xf32> -> vector<1x112xf32>
    %cst_62 = arith.constant dense<0.000000e+00> : vector<1x128xf32>
    %192 = tpu.matmul %191, %0, %cst_62 {dimension_numbers = #tpu.dot_dimension_numbers<[1], [0], [0], [1], [0, 0, 1, 1], [], []>} : vector<1x112xf32>, vector<112x128xf32>, vector<1x128xf32> -> vector<1x128xf32>
    %193 = vector.extract_strided_slice %192 {offsets = [0, 0], sizes = [1, 64], strides = [1, 1]} : vector<1x128xf32> to vector<1x64xf32>
    %194 = arith.negf %193 : vector<1x64xf32>
    %195 = math.exp %194 : vector<1x64xf32>
    %cst_63 = arith.constant 1.000000e+00 : f32
    %196 = vector.broadcast %cst_63 : f32 to vector<1x64xf32>
    %197 = arith.addf %196, %195 : vector<1x64xf32>
    %198 = arith.divf %196, %197 : vector<1x64xf32>
    %199 = vector.extract_strided_slice %198 {offsets = [0, 0], sizes = [1, 32], strides = [1, 1]} : vector<1x64xf32> to vector<1x32xf32>
    %200 = vector.extract_strided_slice %198 {offsets = [0, 32], sizes = [1, 32], strides = [1, 1]} : vector<1x64xf32> to vector<1x32xf32>
    %201 = vector.extract_strided_slice %192 {offsets = [0, 64], sizes = [1, 32], strides = [1, 1]} : vector<1x128xf32> to vector<1x32xf32>
    %202 = vector.extract_strided_slice %192 {offsets = [0, 96], sizes = [1, 32], strides = [1, 1]} : vector<1x128xf32> to vector<1x32xf32>
    %203 = arith.mulf %199, %202 : vector<1x32xf32>
    %204 = arith.addf %201, %203 : vector<1x32xf32>
    %205 = math.tanh %204 : vector<1x32xf32>
    %cst_64 = arith.constant 1.000000e+00 : f32
    %206 = vector.broadcast %cst_64 : f32 to vector<1x32xf32>
    %207 = arith.subf %206, %200 : vector<1x32xf32>
    %208 = arith.mulf %207, %205 : vector<1x32xf32>
    %209 = arith.mulf %200, %158 : vector<1x32xf32>
    %210 = arith.addf %208, %209 : vector<1x32xf32>
    %211 = tpu.concatenate %210, %190, %8 in 1 : vector<1x32xf32>, vector<1x40xf32>, vector<1x8xf32> -> vector<1x80xf32>
    %cst_65 = arith.constant dense<0.000000e+00> : vector<1x32xf32>
    %212 = tpu.matmul %211, %1, %cst_65 {dimension_numbers = #tpu.dot_dimension_numbers<[1], [0], [0], [1], [0, 0, 1, 1], [], []>} : vector<1x80xf32>, vector<80x32xf32>, vector<1x32xf32> -> vector<1x32xf32>
    %cst_66 = arith.constant 0.000000e+00 : f32
    %213 = vector.broadcast %cst_66 : f32 to vector<1x32xf32>
    %214 = arith.maximumf %212, %213 : vector<1x32xf32>
    %cst_67 = arith.constant dense<0.000000e+00> : vector<1x32xf32>
    %215 = tpu.matmul %214, %2, %cst_67 {dimension_numbers = #tpu.dot_dimension_numbers<[1], [0], [0], [1], [0, 0, 1, 1], [], []>} : vector<1x32xf32>, vector<32x32xf32>, vector<1x32xf32> -> vector<1x32xf32>
    %c3 = arith.constant 3 : index
    %c0_68 = arith.constant 0 : index
    %216 = vector.load %arg3[%c3, %c0_68] : memref<9x64xf32, #tpu.memory_space<vmem>>, vector<1x32xf32>
    tpu.vector_store %arg3[%c3, %c0_68], %189 {strides = array<i32>} : memref<9x64xf32, #tpu.memory_space<vmem>>, vector<1x32xf32>,
    %217 = vector.extract_strided_slice %185 {offsets = [0, 0], sizes = [1, 8], strides = [1, 1]} : vector<2x8xf32> to vector<1x8xf32>
    %218 = vector.extract_strided_slice %185 {offsets = [1, 0], sizes = [1, 8], strides = [1, 1]} : vector<2x8xf32> to vector<1x8xf32>
    %219 = tpu.concatenate %217, %218 in 1 : vector<1x8xf32>, vector<1x8xf32> -> vector<1x16xf32>
    %c3_69 = arith.constant 3 : index
    %c32_70 = arith.constant 32 : index
    %220 = vector.load %arg3[%c3_69, %c32_70] : memref<9x64xf32, #tpu.memory_space<vmem>>, vector<1x16xf32>
    tpu.vector_store %arg3[%c3_69, %c32_70], %219 {strides = array<i32>} : memref<9x64xf32, #tpu.memory_space<vmem>>, vector<1x16xf32>,
    %c32_71 = arith.constant 32 : index
    %c0_72 = arith.constant 0 : index
    %221 = vector.load %arg0[%c32_71, %c0_72] : memref<72x16xf32, #tpu.memory_space<vmem>>, vector<8x16xf32>
    %222 = vector.extract_strided_slice %3 {offsets = [4, 0], sizes = [1, 8], strides = [1, 1]} : vector<8x8xf32> to vector<1x8xf32>
    %223 = vector.extract_strided_slice %215 {offsets = [0, 0], sizes = [1, 16], strides = [1, 1]} : vector<1x32xf32> to vector<1x16xf32>
    %224 = vector.extract_strided_slice %215 {offsets = [0, 16], sizes = [1, 16], strides = [1, 1]} : vector<1x32xf32> to vector<1x16xf32>
    %225 = tpu.concatenate %223, %224 in 0 : vector<1x16xf32>, vector<1x16xf32> -> vector<2x16xf32>
    %cst_73 = arith.constant dense<0.000000e+00> : vector<2x8xf32>
    %226 = tpu.matmul %225, %221, %cst_73 {dimension_numbers = #tpu.dot_dimension_numbers<[1], [1], [0], [0], [0, 0, 1, 0], [], []>} : vector<2x16xf32>, vector<8x16xf32>, vector<2x8xf32> -> vector<2x8xf32>
    %cst_74 = arith.constant 2.500000e-01 : f32
    %227 = vector.broadcast %cst_74 : f32 to vector<2x8xf32>
    %228 = arith.mulf %226, %227 : vector<2x8xf32>
    %cst_75 = arith.constant dense<0xFF800000> : vector<2xf32>
    %229 = vector.multi_reduction <maximumf>, %228, %cst_75 [1] : vector<2x8xf32> to vector<2xf32>
    %230 = vector.shape_cast %229 : vector<2xf32> to vector<2x1xf32>
    %231 = vector.broadcast %230 : vector<2x1xf32> to vector<2x8xf32>
    %232 = arith.subf %228, %231 : vector<2x8xf32>
    %233 = math.exp %232 : vector<2x8xf32>
    %cst_76 = arith.constant dense<0.000000e+00> : vector<2xf32>
    %234 = vector.multi_reduction <add>, %233, %cst_76 [1] : vector<2x8xf32> to vector<2xf32>
    %235 = vector.shape_cast %234 : vector<2xf32> to vector<2x1xf32>
    %236 = vector.broadcast %235 : vector<2x1xf32> to vector<2x8xf32>
    %237 = arith.divf %233, %236 : vector<2x8xf32>
    %cst_77 = arith.constant dense<0.000000e+00> : vector<2x16xf32>
    %238 = tpu.matmul %237, %221, %cst_77 {dimension_numbers = #tpu.dot_dimension_numbers<[1], [0], [0], [1], [0, 0, 1, 1], [], []>} : vector<2x8xf32>, vector<8x16xf32>, vector<2x16xf32> -> vector<2x16xf32>
    %239 = vector.extract_strided_slice %238 {offsets = [0, 0], sizes = [1, 16], strides = [1, 1]} : vector<2x16xf32> to vector<1x16xf32>
    %240 = vector.extract_strided_slice %238 {offsets = [1, 0], sizes = [1, 16], strides = [1, 1]} : vector<2x16xf32> to vector<1x16xf32>
    %241 = tpu.concatenate %239, %240 in 1 : vector<1x16xf32>, vector<1x16xf32> -> vector<1x32xf32>
    %242 = tpu.concatenate %222, %241 in 1 : vector<1x8xf32>, vector<1x32xf32> -> vector<1x40xf32>
    %243 = tpu.concatenate %210, %242, %215, %8 in 1 : vector<1x32xf32>, vector<1x40xf32>, vector<1x32xf32>, vector<1x8xf32> -> vector<1x112xf32>
    %cst_78 = arith.constant dense<0.000000e+00> : vector<1x128xf32>
    %244 = tpu.matmul %243, %0, %cst_78 {dimension_numbers = #tpu.dot_dimension_numbers<[1], [0], [0], [1], [0, 0, 1, 1], [], []>} : vector<1x112xf32>, vector<112x128xf32>, vector<1x128xf32> -> vector<1x128xf32>
    %245 = vector.extract_strided_slice %244 {offsets = [0, 0], sizes = [1, 64], strides = [1, 1]} : vector<1x128xf32> to vector<1x64xf32>
    %246 = arith.negf %245 : vector<1x64xf32>
    %247 = math.exp %246 : vector<1x64xf32>
    %cst_79 = arith.constant 1.000000e+00 : f32
    %248 = vector.broadcast %cst_79 : f32 to vector<1x64xf32>
    %249 = arith.addf %248, %247 : vector<1x64xf32>
    %250 = arith.divf %248, %249 : vector<1x64xf32>
    %251 = vector.extract_strided_slice %250 {offsets = [0, 0], sizes = [1, 32], strides = [1, 1]} : vector<1x64xf32> to vector<1x32xf32>
    %252 = vector.extract_strided_slice %250 {offsets = [0, 32], sizes = [1, 32], strides = [1, 1]} : vector<1x64xf32> to vector<1x32xf32>
    %253 = vector.extract_strided_slice %244 {offsets = [0, 64], sizes = [1, 32], strides = [1, 1]} : vector<1x128xf32> to vector<1x32xf32>
    %254 = vector.extract_strided_slice %244 {offsets = [0, 96], sizes = [1, 32], strides = [1, 1]} : vector<1x128xf32> to vector<1x32xf32>
    %255 = arith.mulf %251, %254 : vector<1x32xf32>
    %256 = arith.addf %253, %255 : vector<1x32xf32>
    %257 = math.tanh %256 : vector<1x32xf32>
    %cst_80 = arith.constant 1.000000e+00 : f32
    %258 = vector.broadcast %cst_80 : f32 to vector<1x32xf32>
    %259 = arith.subf %258, %252 : vector<1x32xf32>
    %260 = arith.mulf %259, %257 : vector<1x32xf32>
    %261 = arith.mulf %252, %210 : vector<1x32xf32>
    %262 = arith.addf %260, %261 : vector<1x32xf32>
    %263 = tpu.concatenate %262, %242, %8 in 1 : vector<1x32xf32>, vector<1x40xf32>, vector<1x8xf32> -> vector<1x80xf32>
    %cst_81 = arith.constant dense<0.000000e+00> : vector<1x32xf32>
    %264 = tpu.matmul %263, %1, %cst_81 {dimension_numbers = #tpu.dot_dimension_numbers<[1], [0], [0], [1], [0, 0, 1, 1], [], []>} : vector<1x80xf32>, vector<80x32xf32>, vector<1x32xf32> -> vector<1x32xf32>
    %cst_82 = arith.constant 0.000000e+00 : f32
    %265 = vector.broadcast %cst_82 : f32 to vector<1x32xf32>
    %266 = arith.maximumf %264, %265 : vector<1x32xf32>
    %cst_83 = arith.constant dense<0.000000e+00> : vector<1x32xf32>
    %267 = tpu.matmul %266, %2, %cst_83 {dimension_numbers = #tpu.dot_dimension_numbers<[1], [0], [0], [1], [0, 0, 1, 1], [], []>} : vector<1x32xf32>, vector<32x32xf32>, vector<1x32xf32> -> vector<1x32xf32>
    %c4 = arith.constant 4 : index
    %c0_84 = arith.constant 0 : index
    %268 = vector.load %arg3[%c4, %c0_84] : memref<9x64xf32, #tpu.memory_space<vmem>>, vector<1x32xf32>
    tpu.vector_store %arg3[%c4, %c0_84], %241 {strides = array<i32>} : memref<9x64xf32, #tpu.memory_space<vmem>>, vector<1x32xf32>,
    %269 = vector.extract_strided_slice %237 {offsets = [0, 0], sizes = [1, 8], strides = [1, 1]} : vector<2x8xf32> to vector<1x8xf32>
    %270 = vector.extract_strided_slice %237 {offsets = [1, 0], sizes = [1, 8], strides = [1, 1]} : vector<2x8xf32> to vector<1x8xf32>
    %271 = tpu.concatenate %269, %270 in 1 : vector<1x8xf32>, vector<1x8xf32> -> vector<1x16xf32>
    %c4_85 = arith.constant 4 : index
    %c32_86 = arith.constant 32 : index
    %272 = vector.load %arg3[%c4_85, %c32_86] : memref<9x64xf32, #tpu.memory_space<vmem>>, vector<1x16xf32>
    tpu.vector_store %arg3[%c4_85, %c32_86], %271 {strides = array<i32>} : memref<9x64xf32, #tpu.memory_space<vmem>>, vector<1x16xf32>,
    %c40 = arith.constant 40 : index
    %c0_87 = arith.constant 0 : index
    %273 = vector.load %arg0[%c40, %c0_87] : memref<72x16xf32, #tpu.memory_space<vmem>>, vector<8x16xf32>
    %274 = vector.extract_strided_slice %3 {offsets = [5, 0], sizes = [1, 8], strides = [1, 1]} : vector<8x8xf32> to vector<1x8xf32>
    %275 = vector.extract_strided_slice %267 {offsets = [0, 0], sizes = [1, 16], strides = [1, 1]} : vector<1x32xf32> to vector<1x16xf32>
    %276 = vector.extract_strided_slice %267 {offsets = [0, 16], sizes = [1, 16], strides = [1, 1]} : vector<1x32xf32> to vector<1x16xf32>
    %277 = tpu.concatenate %275, %276 in 0 : vector<1x16xf32>, vector<1x16xf32> -> vector<2x16xf32>
    %cst_88 = arith.constant dense<0.000000e+00> : vector<2x8xf32>
    %278 = tpu.matmul %277, %273, %cst_88 {dimension_numbers = #tpu.dot_dimension_numbers<[1], [1], [0], [0], [0, 0, 1, 0], [], []>} : vector<2x16xf32>, vector<8x16xf32>, vector<2x8xf32> -> vector<2x8xf32>
    %cst_89 = arith.constant 2.500000e-01 : f32
    %279 = vector.broadcast %cst_89 : f32 to vector<2x8xf32>
    %280 = arith.mulf %278, %279 : vector<2x8xf32>
    %cst_90 = arith.constant dense<0xFF800000> : vector<2xf32>
    %281 = vector.multi_reduction <maximumf>, %280, %cst_90 [1] : vector<2x8xf32> to vector<2xf32>
    %282 = vector.shape_cast %281 : vector<2xf32> to vector<2x1xf32>
    %283 = vector.broadcast %282 : vector<2x1xf32> to vector<2x8xf32>
    %284 = arith.subf %280, %283 : vector<2x8xf32>
    %285 = math.exp %284 : vector<2x8xf32>
    %cst_91 = arith.constant dense<0.000000e+00> : vector<2xf32>
    %286 = vector.multi_reduction <add>, %285, %cst_91 [1] : vector<2x8xf32> to vector<2xf32>
    %287 = vector.shape_cast %286 : vector<2xf32> to vector<2x1xf32>
    %288 = vector.broadcast %287 : vector<2x1xf32> to vector<2x8xf32>
    %289 = arith.divf %285, %288 : vector<2x8xf32>
    %cst_92 = arith.constant dense<0.000000e+00> : vector<2x16xf32>
    %290 = tpu.matmul %289, %273, %cst_92 {dimension_numbers = #tpu.dot_dimension_numbers<[1], [0], [0], [1], [0, 0, 1, 1], [], []>} : vector<2x8xf32>, vector<8x16xf32>, vector<2x16xf32> -> vector<2x16xf32>
    %291 = vector.extract_strided_slice %290 {offsets = [0, 0], sizes = [1, 16], strides = [1, 1]} : vector<2x16xf32> to vector<1x16xf32>
    %292 = vector.extract_strided_slice %290 {offsets = [1, 0], sizes = [1, 16], strides = [1, 1]} : vector<2x16xf32> to vector<1x16xf32>
    %293 = tpu.concatenate %291, %292 in 1 : vector<1x16xf32>, vector<1x16xf32> -> vector<1x32xf32>
    %294 = tpu.concatenate %274, %293 in 1 : vector<1x8xf32>, vector<1x32xf32> -> vector<1x40xf32>
    %295 = tpu.concatenate %262, %294, %267, %8 in 1 : vector<1x32xf32>, vector<1x40xf32>, vector<1x32xf32>, vector<1x8xf32> -> vector<1x112xf32>
    %cst_93 = arith.constant dense<0.000000e+00> : vector<1x128xf32>
    %296 = tpu.matmul %295, %0, %cst_93 {dimension_numbers = #tpu.dot_dimension_numbers<[1], [0], [0], [1], [0, 0, 1, 1], [], []>} : vector<1x112xf32>, vector<112x128xf32>, vector<1x128xf32> -> vector<1x128xf32>
    %297 = vector.extract_strided_slice %296 {offsets = [0, 0], sizes = [1, 64], strides = [1, 1]} : vector<1x128xf32> to vector<1x64xf32>
    %298 = arith.negf %297 : vector<1x64xf32>
    %299 = math.exp %298 : vector<1x64xf32>
    %cst_94 = arith.constant 1.000000e+00 : f32
    %300 = vector.broadcast %cst_94 : f32 to vector<1x64xf32>
    %301 = arith.addf %300, %299 : vector<1x64xf32>
    %302 = arith.divf %300, %301 : vector<1x64xf32>
    %303 = vector.extract_strided_slice %302 {offsets = [0, 0], sizes = [1, 32], strides = [1, 1]} : vector<1x64xf32> to vector<1x32xf32>
    %304 = vector.extract_strided_slice %302 {offsets = [0, 32], sizes = [1, 32], strides = [1, 1]} : vector<1x64xf32> to vector<1x32xf32>
    %305 = vector.extract_strided_slice %296 {offsets = [0, 64], sizes = [1, 32], strides = [1, 1]} : vector<1x128xf32> to vector<1x32xf32>
    %306 = vector.extract_strided_slice %296 {offsets = [0, 96], sizes = [1, 32], strides = [1, 1]} : vector<1x128xf32> to vector<1x32xf32>
    %307 = arith.mulf %303, %306 : vector<1x32xf32>
    %308 = arith.addf %305, %307 : vector<1x32xf32>
    %309 = math.tanh %308 : vector<1x32xf32>
    %cst_95 = arith.constant 1.000000e+00 : f32
    %310 = vector.broadcast %cst_95 : f32 to vector<1x32xf32>
    %311 = arith.subf %310, %304 : vector<1x32xf32>
    %312 = arith.mulf %311, %309 : vector<1x32xf32>
    %313 = arith.mulf %304, %262 : vector<1x32xf32>
    %314 = arith.addf %312, %313 : vector<1x32xf32>
    %315 = tpu.concatenate %314, %294, %8 in 1 : vector<1x32xf32>, vector<1x40xf32>, vector<1x8xf32> -> vector<1x80xf32>
    %cst_96 = arith.constant dense<0.000000e+00> : vector<1x32xf32>
    %316 = tpu.matmul %315, %1, %cst_96 {dimension_numbers = #tpu.dot_dimension_numbers<[1], [0], [0], [1], [0, 0, 1, 1], [], []>} : vector<1x80xf32>, vector<80x32xf32>, vector<1x32xf32> -> vector<1x32xf32>
    %cst_97 = arith.constant 0.000000e+00 : f32
    %317 = vector.broadcast %cst_97 : f32 to vector<1x32xf32>
    %318 = arith.maximumf %316, %317 : vector<1x32xf32>
    %cst_98 = arith.constant dense<0.000000e+00> : vector<1x32xf32>
    %319 = tpu.matmul %318, %2, %cst_98 {dimension_numbers = #tpu.dot_dimension_numbers<[1], [0], [0], [1], [0, 0, 1, 1], [], []>} : vector<1x32xf32>, vector<32x32xf32>, vector<1x32xf32> -> vector<1x32xf32>
    %c5 = arith.constant 5 : index
    %c0_99 = arith.constant 0 : index
    %320 = vector.load %arg3[%c5, %c0_99] : memref<9x64xf32, #tpu.memory_space<vmem>>, vector<1x32xf32>
    tpu.vector_store %arg3[%c5, %c0_99], %293 {strides = array<i32>} : memref<9x64xf32, #tpu.memory_space<vmem>>, vector<1x32xf32>,
    %321 = vector.extract_strided_slice %289 {offsets = [0, 0], sizes = [1, 8], strides = [1, 1]} : vector<2x8xf32> to vector<1x8xf32>
    %322 = vector.extract_strided_slice %289 {offsets = [1, 0], sizes = [1, 8], strides = [1, 1]} : vector<2x8xf32> to vector<1x8xf32>
    %323 = tpu.concatenate %321, %322 in 1 : vector<1x8xf32>, vector<1x8xf32> -> vector<1x16xf32>
    %c5_100 = arith.constant 5 : index
    %c32_101 = arith.constant 32 : index
    %324 = vector.load %arg3[%c5_100, %c32_101] : memref<9x64xf32, #tpu.memory_space<vmem>>, vector<1x16xf32>
    tpu.vector_store %arg3[%c5_100, %c32_101], %323 {strides = array<i32>} : memref<9x64xf32, #tpu.memory_space<vmem>>, vector<1x16xf32>,
    %c48 = arith.constant 48 : index
    %c0_102 = arith.constant 0 : index
    %325 = vector.load %arg0[%c48, %c0_102] : memref<72x16xf32, #tpu.memory_space<vmem>>, vector<8x16xf32>
    %326 = vector.extract_strided_slice %3 {offsets = [6, 0], sizes = [1, 8], strides = [1, 1]} : vector<8x8xf32> to vector<1x8xf32>
    %327 = vector.extract_strided_slice %319 {offsets = [0, 0], sizes = [1, 16], strides = [1, 1]} : vector<1x32xf32> to vector<1x16xf32>
    %328 = vector.extract_strided_slice %319 {offsets = [0, 16], sizes = [1, 16], strides = [1, 1]} : vector<1x32xf32> to vector<1x16xf32>
    %329 = tpu.concatenate %327, %328 in 0 : vector<1x16xf32>, vector<1x16xf32> -> vector<2x16xf32>
    %cst_103 = arith.constant dense<0.000000e+00> : vector<2x8xf32>
    %330 = tpu.matmul %329, %325, %cst_103 {dimension_numbers = #tpu.dot_dimension_numbers<[1], [1], [0], [0], [0, 0, 1, 0], [], []>} : vector<2x16xf32>, vector<8x16xf32>, vector<2x8xf32> -> vector<2x8xf32>
    %cst_104 = arith.constant 2.500000e-01 : f32
    %331 = vector.broadcast %cst_104 : f32 to vector<2x8xf32>
    %332 = arith.mulf %330, %331 : vector<2x8xf32>
    %cst_105 = arith.constant dense<0xFF800000> : vector<2xf32>
    %333 = vector.multi_reduction <maximumf>, %332, %cst_105 [1] : vector<2x8xf32> to vector<2xf32>
    %334 = vector.shape_cast %333 : vector<2xf32> to vector<2x1xf32>
    %335 = vector.broadcast %334 : vector<2x1xf32> to vector<2x8xf32>
    %336 = arith.subf %332, %335 : vector<2x8xf32>
    %337 = math.exp %336 : vector<2x8xf32>
    %cst_106 = arith.constant dense<0.000000e+00> : vector<2xf32>
    %338 = vector.multi_reduction <add>, %337, %cst_106 [1] : vector<2x8xf32> to vector<2xf32>
    %339 = vector.shape_cast %338 : vector<2xf32> to vector<2x1xf32>
    %340 = vector.broadcast %339 : vector<2x1xf32> to vector<2x8xf32>
    %341 = arith.divf %337, %340 : vector<2x8xf32>
    %cst_107 = arith.constant dense<0.000000e+00> : vector<2x16xf32>
    %342 = tpu.matmul %341, %325, %cst_107 {dimension_numbers = #tpu.dot_dimension_numbers<[1], [0], [0], [1], [0, 0, 1, 1], [], []>} : vector<2x8xf32>, vector<8x16xf32>, vector<2x16xf32> -> vector<2x16xf32>
    %343 = vector.extract_strided_slice %342 {offsets = [0, 0], sizes = [1, 16], strides = [1, 1]} : vector<2x16xf32> to vector<1x16xf32>
    %344 = vector.extract_strided_slice %342 {offsets = [1, 0], sizes = [1, 16], strides = [1, 1]} : vector<2x16xf32> to vector<1x16xf32>
    %345 = tpu.concatenate %343, %344 in 1 : vector<1x16xf32>, vector<1x16xf32> -> vector<1x32xf32>
    %346 = tpu.concatenate %326, %345 in 1 : vector<1x8xf32>, vector<1x32xf32> -> vector<1x40xf32>
    %347 = tpu.concatenate %314, %346, %319, %8 in 1 : vector<1x32xf32>, vector<1x40xf32>, vector<1x32xf32>, vector<1x8xf32> -> vector<1x112xf32>
    %cst_108 = arith.constant dense<0.000000e+00> : vector<1x128xf32>
    %348 = tpu.matmul %347, %0, %cst_108 {dimension_numbers = #tpu.dot_dimension_numbers<[1], [0], [0], [1], [0, 0, 1, 1], [], []>} : vector<1x112xf32>, vector<112x128xf32>, vector<1x128xf32> -> vector<1x128xf32>
    %349 = vector.extract_strided_slice %348 {offsets = [0, 0], sizes = [1, 64], strides = [1, 1]} : vector<1x128xf32> to vector<1x64xf32>
    %350 = arith.negf %349 : vector<1x64xf32>
    %351 = math.exp %350 : vector<1x64xf32>
    %cst_109 = arith.constant 1.000000e+00 : f32
    %352 = vector.broadcast %cst_109 : f32 to vector<1x64xf32>
    %353 = arith.addf %352, %351 : vector<1x64xf32>
    %354 = arith.divf %352, %353 : vector<1x64xf32>
    %355 = vector.extract_strided_slice %354 {offsets = [0, 0], sizes = [1, 32], strides = [1, 1]} : vector<1x64xf32> to vector<1x32xf32>
    %356 = vector.extract_strided_slice %354 {offsets = [0, 32], sizes = [1, 32], strides = [1, 1]} : vector<1x64xf32> to vector<1x32xf32>
    %357 = vector.extract_strided_slice %348 {offsets = [0, 64], sizes = [1, 32], strides = [1, 1]} : vector<1x128xf32> to vector<1x32xf32>
    %358 = vector.extract_strided_slice %348 {offsets = [0, 96], sizes = [1, 32], strides = [1, 1]} : vector<1x128xf32> to vector<1x32xf32>
    %359 = arith.mulf %355, %358 : vector<1x32xf32>
    %360 = arith.addf %357, %359 : vector<1x32xf32>
    %361 = math.tanh %360 : vector<1x32xf32>
    %cst_110 = arith.constant 1.000000e+00 : f32
    %362 = vector.broadcast %cst_110 : f32 to vector<1x32xf32>
    %363 = arith.subf %362, %356 : vector<1x32xf32>
    %364 = arith.mulf %363, %361 : vector<1x32xf32>
    %365 = arith.mulf %356, %314 : vector<1x32xf32>
    %366 = arith.addf %364, %365 : vector<1x32xf32>
    %367 = tpu.concatenate %366, %346, %8 in 1 : vector<1x32xf32>, vector<1x40xf32>, vector<1x8xf32> -> vector<1x80xf32>
    %cst_111 = arith.constant dense<0.000000e+00> : vector<1x32xf32>
    %368 = tpu.matmul %367, %1, %cst_111 {dimension_numbers = #tpu.dot_dimension_numbers<[1], [0], [0], [1], [0, 0, 1, 1], [], []>} : vector<1x80xf32>, vector<80x32xf32>, vector<1x32xf32> -> vector<1x32xf32>
    %cst_112 = arith.constant 0.000000e+00 : f32
    %369 = vector.broadcast %cst_112 : f32 to vector<1x32xf32>
    %370 = arith.maximumf %368, %369 : vector<1x32xf32>
    %cst_113 = arith.constant dense<0.000000e+00> : vector<1x32xf32>
    %371 = tpu.matmul %370, %2, %cst_113 {dimension_numbers = #tpu.dot_dimension_numbers<[1], [0], [0], [1], [0, 0, 1, 1], [], []>} : vector<1x32xf32>, vector<32x32xf32>, vector<1x32xf32> -> vector<1x32xf32>
    %c6 = arith.constant 6 : index
    %c0_114 = arith.constant 0 : index
    %372 = vector.load %arg3[%c6, %c0_114] : memref<9x64xf32, #tpu.memory_space<vmem>>, vector<1x32xf32>
    tpu.vector_store %arg3[%c6, %c0_114], %345 {strides = array<i32>} : memref<9x64xf32, #tpu.memory_space<vmem>>, vector<1x32xf32>,
    %373 = vector.extract_strided_slice %341 {offsets = [0, 0], sizes = [1, 8], strides = [1, 1]} : vector<2x8xf32> to vector<1x8xf32>
    %374 = vector.extract_strided_slice %341 {offsets = [1, 0], sizes = [1, 8], strides = [1, 1]} : vector<2x8xf32> to vector<1x8xf32>
    %375 = tpu.concatenate %373, %374 in 1 : vector<1x8xf32>, vector<1x8xf32> -> vector<1x16xf32>
    %c6_115 = arith.constant 6 : index
    %c32_116 = arith.constant 32 : index
    %376 = vector.load %arg3[%c6_115, %c32_116] : memref<9x64xf32, #tpu.memory_space<vmem>>, vector<1x16xf32>
    tpu.vector_store %arg3[%c6_115, %c32_116], %375 {strides = array<i32>} : memref<9x64xf32, #tpu.memory_space<vmem>>, vector<1x16xf32>,
    %c56 = arith.constant 56 : index
    %c0_117 = arith.constant 0 : index
    %377 = vector.load %arg0[%c56, %c0_117] : memref<72x16xf32, #tpu.memory_space<vmem>>, vector<8x16xf32>
    %378 = vector.extract_strided_slice %3 {offsets = [7, 0], sizes = [1, 8], strides = [1, 1]} : vector<8x8xf32> to vector<1x8xf32>
    %379 = vector.extract_strided_slice %371 {offsets = [0, 0], sizes = [1, 16], strides = [1, 1]} : vector<1x32xf32> to vector<1x16xf32>
    %380 = vector.extract_strided_slice %371 {offsets = [0, 16], sizes = [1, 16], strides = [1, 1]} : vector<1x32xf32> to vector<1x16xf32>
    %381 = tpu.concatenate %379, %380 in 0 : vector<1x16xf32>, vector<1x16xf32> -> vector<2x16xf32>
    %cst_118 = arith.constant dense<0.000000e+00> : vector<2x8xf32>
    %382 = tpu.matmul %381, %377, %cst_118 {dimension_numbers = #tpu.dot_dimension_numbers<[1], [1], [0], [0], [0, 0, 1, 0], [], []>} : vector<2x16xf32>, vector<8x16xf32>, vector<2x8xf32> -> vector<2x8xf32>
    %cst_119 = arith.constant 2.500000e-01 : f32
    %383 = vector.broadcast %cst_119 : f32 to vector<2x8xf32>
    %384 = arith.mulf %382, %383 : vector<2x8xf32>
    %cst_120 = arith.constant dense<0xFF800000> : vector<2xf32>
    %385 = vector.multi_reduction <maximumf>, %384, %cst_120 [1] : vector<2x8xf32> to vector<2xf32>
    %386 = vector.shape_cast %385 : vector<2xf32> to vector<2x1xf32>
    %387 = vector.broadcast %386 : vector<2x1xf32> to vector<2x8xf32>
    %388 = arith.subf %384, %387 : vector<2x8xf32>
    %389 = math.exp %388 : vector<2x8xf32>
    %cst_121 = arith.constant dense<0.000000e+00> : vector<2xf32>
    %390 = vector.multi_reduction <add>, %389, %cst_121 [1] : vector<2x8xf32> to vector<2xf32>
    %391 = vector.shape_cast %390 : vector<2xf32> to vector<2x1xf32>
    %392 = vector.broadcast %391 : vector<2x1xf32> to vector<2x8xf32>
    %393 = arith.divf %389, %392 : vector<2x8xf32>
    %cst_122 = arith.constant dense<0.000000e+00> : vector<2x16xf32>
    %394 = tpu.matmul %393, %377, %cst_122 {dimension_numbers = #tpu.dot_dimension_numbers<[1], [0], [0], [1], [0, 0, 1, 1], [], []>} : vector<2x8xf32>, vector<8x16xf32>, vector<2x16xf32> -> vector<2x16xf32>
    %395 = vector.extract_strided_slice %394 {offsets = [0, 0], sizes = [1, 16], strides = [1, 1]} : vector<2x16xf32> to vector<1x16xf32>
    %396 = vector.extract_strided_slice %394 {offsets = [1, 0], sizes = [1, 16], strides = [1, 1]} : vector<2x16xf32> to vector<1x16xf32>
    %397 = tpu.concatenate %395, %396 in 1 : vector<1x16xf32>, vector<1x16xf32> -> vector<1x32xf32>
    %398 = tpu.concatenate %378, %397 in 1 : vector<1x8xf32>, vector<1x32xf32> -> vector<1x40xf32>
    %399 = tpu.concatenate %366, %398, %371, %8 in 1 : vector<1x32xf32>, vector<1x40xf32>, vector<1x32xf32>, vector<1x8xf32> -> vector<1x112xf32>
    %cst_123 = arith.constant dense<0.000000e+00> : vector<1x128xf32>
    %400 = tpu.matmul %399, %0, %cst_123 {dimension_numbers = #tpu.dot_dimension_numbers<[1], [0], [0], [1], [0, 0, 1, 1], [], []>} : vector<1x112xf32>, vector<112x128xf32>, vector<1x128xf32> -> vector<1x128xf32>
    %401 = vector.extract_strided_slice %400 {offsets = [0, 0], sizes = [1, 64], strides = [1, 1]} : vector<1x128xf32> to vector<1x64xf32>
    %402 = arith.negf %401 : vector<1x64xf32>
    %403 = math.exp %402 : vector<1x64xf32>
    %cst_124 = arith.constant 1.000000e+00 : f32
    %404 = vector.broadcast %cst_124 : f32 to vector<1x64xf32>
    %405 = arith.addf %404, %403 : vector<1x64xf32>
    %406 = arith.divf %404, %405 : vector<1x64xf32>
    %407 = vector.extract_strided_slice %406 {offsets = [0, 0], sizes = [1, 32], strides = [1, 1]} : vector<1x64xf32> to vector<1x32xf32>
    %408 = vector.extract_strided_slice %406 {offsets = [0, 32], sizes = [1, 32], strides = [1, 1]} : vector<1x64xf32> to vector<1x32xf32>
    %409 = vector.extract_strided_slice %400 {offsets = [0, 64], sizes = [1, 32], strides = [1, 1]} : vector<1x128xf32> to vector<1x32xf32>
    %410 = vector.extract_strided_slice %400 {offsets = [0, 96], sizes = [1, 32], strides = [1, 1]} : vector<1x128xf32> to vector<1x32xf32>
    %411 = arith.mulf %407, %410 : vector<1x32xf32>
    %412 = arith.addf %409, %411 : vector<1x32xf32>
    %413 = math.tanh %412 : vector<1x32xf32>
    %cst_125 = arith.constant 1.000000e+00 : f32
    %414 = vector.broadcast %cst_125 : f32 to vector<1x32xf32>
    %415 = arith.subf %414, %408 : vector<1x32xf32>
    %416 = arith.mulf %415, %413 : vector<1x32xf32>
    %417 = arith.mulf %408, %366 : vector<1x32xf32>
    %418 = arith.addf %416, %417 : vector<1x32xf32>
    %419 = tpu.concatenate %418, %398, %8 in 1 : vector<1x32xf32>, vector<1x40xf32>, vector<1x8xf32> -> vector<1x80xf32>
    %cst_126 = arith.constant dense<0.000000e+00> : vector<1x32xf32>
    %420 = tpu.matmul %419, %1, %cst_126 {dimension_numbers = #tpu.dot_dimension_numbers<[1], [0], [0], [1], [0, 0, 1, 1], [], []>} : vector<1x80xf32>, vector<80x32xf32>, vector<1x32xf32> -> vector<1x32xf32>
    %cst_127 = arith.constant 0.000000e+00 : f32
    %421 = vector.broadcast %cst_127 : f32 to vector<1x32xf32>
    %422 = arith.maximumf %420, %421 : vector<1x32xf32>
    %cst_128 = arith.constant dense<0.000000e+00> : vector<1x32xf32>
    %423 = tpu.matmul %422, %2, %cst_128 {dimension_numbers = #tpu.dot_dimension_numbers<[1], [0], [0], [1], [0, 0, 1, 1], [], []>} : vector<1x32xf32>, vector<32x32xf32>, vector<1x32xf32> -> vector<1x32xf32>
    %c7 = arith.constant 7 : index
    %c0_129 = arith.constant 0 : index
    %424 = vector.load %arg3[%c7, %c0_129] : memref<9x64xf32, #tpu.memory_space<vmem>>, vector<1x32xf32>
    tpu.vector_store %arg3[%c7, %c0_129], %397 {strides = array<i32>} : memref<9x64xf32, #tpu.memory_space<vmem>>, vector<1x32xf32>,
    %425 = vector.extract_strided_slice %393 {offsets = [0, 0], sizes = [1, 8], strides = [1, 1]} : vector<2x8xf32> to vector<1x8xf32>
    %426 = vector.extract_strided_slice %393 {offsets = [1, 0], sizes = [1, 8], strides = [1, 1]} : vector<2x8xf32> to vector<1x8xf32>
    %427 = tpu.concatenate %425, %426 in 1 : vector<1x8xf32>, vector<1x8xf32> -> vector<1x16xf32>
    %c7_130 = arith.constant 7 : index
    %c32_131 = arith.constant 32 : index
    %428 = vector.load %arg3[%c7_130, %c32_131] : memref<9x64xf32, #tpu.memory_space<vmem>>, vector<1x16xf32>
    tpu.vector_store %arg3[%c7_130, %c32_131], %427 {strides = array<i32>} : memref<9x64xf32, #tpu.memory_space<vmem>>, vector<1x16xf32>,
    %c8_132 = arith.constant 8 : index
    %c0_133 = arith.constant 0 : index
    %429 = vector.load %arg3[%c8_132, %c0_133] : memref<9x64xf32, #tpu.memory_space<vmem>>, vector<1x32xf32>
    tpu.vector_store %arg3[%c8_132, %c0_133], %418 {strides = array<i32>} : memref<9x64xf32, #tpu.memory_space<vmem>>, vector<1x32xf32>,
    %c8_134 = arith.constant 8 : index
    %c32_135 = arith.constant 32 : index
    %430 = vector.load %arg3[%c8_134, %c32_135] : memref<9x64xf32, #tpu.memory_space<vmem>>, vector<1x32xf32>
    tpu.vector_store %arg3[%c8_134, %c32_135], %423 {strides = array<i32>} : memref<9x64xf32, #tpu.memory_space<vmem>>, vector<1x32xf32>,
    return
  }
}

</mosaic_0001>

<bundles_post_ra>
// kernel: attention_forward.1
= control target key start
LH: loop header
LB: loop body
LE: loop exit
PB: predicated region body
PF: predicated region fallthrough
CT: control target
= control target key end

     0   :  { %8 = vsyncpa [#allocation3], 0  ;;  %s5115_s12 = smov [#allocation2]   ;;  %s5993_s0 = inlined_call_operand.vmem [shape: f32[72,16], index: 0, kind: input, shape index: {}]   ;;  %s5994_s1 = inlined_call_operand.hbm [shape: f32[224,128], index: 1, kind: input, shape index: {}]   ;;  %s5995_s2 = inlined_call_operand.vmem [shape: f32[2,32], index: 2, kind: input, shape index: {}]   ;;  %s5996_s3 = inlined_call_operand.vmem [shape: f32[9,64], index: 3, kind: output, shape index: {}]  }
   0x1   :  { %s16_s13 = sshll.u32 %s5115_s12, 4  ;;  %s5091_s16 = scalar_lea.hbm %s5994_s1, 3584  ;;  %s17_s13 = int_to_ptr.vmem [resolvable:$true] %s16_s13 }
   0x2   :  { %p5092_p0 = scmp.ne.s32.totalorder %s5994_s1, %s5091_s16  ;;  %p5095_p1 = scmp.lt.u32.totalorder %s5091_s16, %s5994_s1 }
   0x4   :  { %p5097_p2 = pnand %p5095_p1, %p5092_p0 }
   0x6   :  { %5100 = shalt.err (!%p5097_p2)
}
   0x7   :  { %s5101_s21 = scalar_lea.vmem %s17_s13, 3584  ;;  %p5106_p4 = scmp.lt.s32.totalorder %s17_s13, %s17_s13 }
   0x8   :  { %p5102_p3 = scmp.ne.s32.totalorder %s17_s13, %s5101_s21  ;;  %p5107_p5 = scmp.lt.s32.totalorder %s5101_s21, %s5101_s21 }
   0xa   :  { %p5108_p6 = por %p5107_p5, %p5106_p4 }
   0xc   :  { %p5109_p7 = pnand %p5108_p6, %p5102_p3 }
   0xe   :  { %5112 = shalt.err (!%p5109_p7)
}
   0xf   :  { %s5116_s22 = smov 128   ;;  %s5117_s23 = smov 8  }
  0x10   :  { %22 = dma.hbm_to_vmem [thread:$0]  %s5994_s1, 3584, %s17_s13, [#allocation3], %s5116_s22, %s5116_s22, %s5117_s23  }
  0x11   :  { %5113 = dma.done.wait [#allocation3], 3584  }
  0x12   :  { %5114 = vsyncadd [#allocation3], 4294963712  ;;  %v5118_v0 = vmov 0.0   ;;  %vm5119_vm0 = vmmov 0   ;;  %vm76_vm1 = vcmask 130048   ;;  %v68_v2 = vld [vmem:[%s5993_s0] sm:$0xff]  ;;  %v57_v45 = vlaneseq }
  0x13   :  { %4061 = vmatprep.subr.mxu0 %v5118_v0  ;;  %4066 = vmatprep.subr.mxu1 %v5118_v0  ;;  %v5170_v1 = vld [vmem:[%s5995_s2 + $0x1] sm:$0x1]  ;;  %s5120_s29 = smov 112   ;;  %vm74_vm2 = vcmask 1040384   ;;  %vm154_vm3 = vcmask 58368   ;;  %vm166_vm4 = vcmask 64512  }
  0x14   :  { %4063 = vmatprep.mubr.msk.f32.mxu0 %vm5119_vm0, %v5118_v0  ;;  %4068 = vmatprep.mubr.msk.f32.mxu1 %vm5119_vm0, %v5118_v0  ;;  %v70_v3 = vrot.slane %v5170_v1, 7  ;;  %vm62_vm5 = vcmask 523264   ;;  %s5121_s5 = smov 16   ;;  %v28_v21 = vld [vmem:[#allocation2] sm:$0xff]  ;;  %v29_v22 = vld [vmem:[#allocation2 + $0x8] sm:$0xff]  ;;  %v30_v23 = vld [vmem:[#allocation2 + $0x10] sm:$0xff] }
  0x15   :  { %4062 = vmatpush3.xpose.msk.msra.mxu0 %vm76_vm1, %v68_v2  ;;  %4067 = vmatpush3.msra.mxu1 %v68_v2  ;;  %63 = vst.msk [vmem:[%s5996_s3] sm:$0xff] %vm62_vm5, %v5118_v0  ;;  %v5122_v24 = vmov 0.0|0.0   ;;  %v5197_v25 = vpack.c.bf16 %v29_v22, %v28_v21  ;;  %v31_v26 = vld [vmem:[#allocation2 + $0x18] sm:$0xff]  ;;  %v32_v28 = vld [vmem:[#allocation2 + $0x20] sm:$0xff]  ;;  %v33_v29 = vld [vmem:[#allocation2 + $0x28] sm:$0xff]  ;;  %vm528_vm6 = vcmask 253952  }
  0x16   :  { %71 = vrot.lane.b32.xlu0 %v70_v3, %s5120_s29  ;;  %4661 = vmatprep.subr.bf16.mxu1 %v5122_v24  ;;  %v5201_v27 = vpack.c.bf16 %v31_v26, %v30_v23  ;;  %v5206_v32 = vpack.c.bf16 %v33_v29, %v32_v28  ;;  %v34_v33 = vld [vmem:[#allocation2 + $0x30] sm:$0xff]  ;;  %v35_v34 = vld [vmem:[#allocation2 + $0x38] sm:$0xff]  ;;  %s5123_s8 = smov 72   ;;  %v36_v36 = vld [vmem:[#allocation2 + $0x40] sm:$0xff]  ;;  %v58_v46 = vand.u32 127, %v57_v45  ;;  %s5124_s11 = smov 32  }
  0x17   :  { %4682 = vmatprep.subr.bf16.mxu0 %v5122_v24  ;;  %v5215_v35 = vpack.c.bf16 %v35_v34, %v34_v33  ;;  %v37_v37 = vld [vmem:[#allocation2 + $0x48] sm:$0xff]  ;;  %v38_v39 = vld [vmem:[#allocation2 + $0x50] sm:$0xff]  ;;  %v39_v40 = vld [vmem:[#allocation2 + $0x58] sm:$0xff]  ;;  %s5125_s12 = smov 104   ;;  %vm262_vm8 = vcmask 261120   ;;  %vm264_vm9 = vcmask 588800  }
  0x18   :  { %v5221_v38 = vpack.c.bf16 %v37_v37, %v36_v36  ;;  %v5225_v41 = vpack.c.bf16 %v39_v40, %v38_v39  ;;  %v40_v42 = vld [vmem:[#allocation2 + $0x60] sm:$0xff]  ;;  %v41_v43 = vld [vmem:[#allocation2 + $0x68] sm:$0xff]  ;;  %vm59_vm7 = vcmp.eq.s32.totalorder %v58_v46, 0  ;;  %vm266_vm10 = vcmask 850944   ;;  %s5127_s15 = smov 96  }
  0x19   :  { %v5230_v44 = vpack.c.bf16 %v41_v43, %v40_v42  ;;  %v5237_v47 = vld [vmem:[%s5993_s0 + $0x40] sm:$0xff]  ;;  %v5243_v50 = vsel %vm59_vm7, 1.0, %v5118_v0  ;;  %vm268_vm11 = vcmask 916480   ;;  %v53_v34 = vld [vmem:[#allocation2 + $0xc8] sm:$0xff]  ;;  %vm380_vm12 = vcmask 654336   ;;  %v54_v42 = vld [vmem:[#allocation2 + $0xd0] sm:$0xff] }
  0x1a   :  { %v66_v52 = vld [vmem:[%s5995_s2] sm:$0x1]  ;;  %s5126_s2 = smov 64   ;;  %v55_v43 = vld [vmem:[#allocation2 + $0xd8] sm:$0xff]  ;;  %vm64_vm13 = vcmask 516096   ;;  %vm539_vm14 = vcmask 385280  }
  0x1b   :  { %v52_v33 = vld [vmem:[#allocation2 + $0xc0] sm:$0xff]  ;;  %v5307_v45 = vpack.c.bf16 %v55_v43, %v54_v42  ;;  %65 = vst.msk [vmem:[%s5996_s3 + $0x8] sm:$0x1] %vm64_vm13, %v5118_v0  ;;  %vm3717_vm15 = vcmask 516352  }
  0x1c   :  { %v5293_v36 = vpack.c.bf16 %v53_v34, %v52_v33 }
  0x88   :  { %v72_v4 = vpop.permute.xlu0 %71 }
  0x89   :  { %v75_v5 = vsel %vm74_vm2, %v5170_v1, %v72_v4 }
  0x8a   :  { %4064 = vmatmul.mubr.msk.f32.vlgmr.msra.gmra.mrb[0].mxu0 %vm76_vm1, %v75_v5 }
  0x8b   :  { %4122 = vmatprep.mubr.msk.f32.mxu0 %vm5119_vm0, %v5118_v0 }
 0x15d   :  { %v149_v6 = vpop.f32.mrb[0].mxu0 }
 0x15e   :  { %v153_v7 = vmul.f32 0.25, %v149_v6  ;;  %v4065_v8 = vpop.f32.mrb[1].mxu0  ;;  %v42_v6 = vld [vmem:[#allocation2 + $0x70] sm:$0xff] }
 0x15f   :  { %v44_v8 = vld [vmem:[#allocation2 + $0x80] sm:$0xff] }
 0x160   :  { %v155_v9 = vsel %vm154_vm3, %v153_v7, -inf }
 0x161   :  { %156 = vmax.xlane.f32.xlu0 %v155_v9 }
 0x1ee   :  { %v157_v10 = vpop.xlane.xlu0 %156 }
 0x1ef   :  { %v158_v11 = vsub.f32 %v153_v7, %v157_v10  ;;  %v43_v7 = vld [vmem:[#allocation2 + $0x78] sm:$0xff]  ;;  %v45_v10 = vld [vmem:[#allocation2 + $0x88] sm:$0xff] }
 0x1f0   :  { %v5264_v9 = vpack.c.bf16 %v43_v7, %v42_v6 }
 0x1f1   :  { %v159_v12 = vmul.f32 1.442695, %v158_v11  ;;  %v5267_v11 = vpack.c.bf16 %v45_v10, %v44_v8 }
 0x1f2   :  { %4684 = vmatpush3.bf16.msra.mxu0 %v5264_v9 }
 0x1f3   :  { %5010 = vpow2.f32 %v159_v12  ;;  %4685 = vmatprep.subr.bf16.mxu0 %v5122_v24  ;;  %v46_v12 = vld [vmem:[#allocation2 + $0x90] sm:$0xff] }
 0x1f6   :  { %4687 = vmatpush3.bf16.msra.mxu0 %v5267_v11 }
 0x1f7   :  { %4688 = vmatprep.subr.bf16.mxu0 %v5122_v24 }
 0x1fd   :  { %v5011_v13 = vpop.eup %5010 }
 0x1fe   :  { %v161_v14 = vsel %vm154_vm3, %v5011_v13, 0.0 }
 0x1ff   :  { %162 = vadd.xlane.f32.xlu1 %v161_v14 }
 0x28c   :  { %v163_v15 = vpop.xlane.xlu1 %162 }
 0x28d   :  { %5012 = vrcp.f32 %v163_v15  ;;  %v48_v15 = vld [vmem:[#allocation2 + $0xa0] sm:$0xff] }
 0x297   :  { %v5013_v16 = vpop.eup %5012 }
 0x298   :  { %v5185_v17 = vmul.f32 %v5013_v16, %v5011_v13  ;;  %v47_v13 = vld [vmem:[#allocation2 + $0x98] sm:$0xff]  ;;  %v49_v16 = vld [vmem:[#allocation2 + $0xa8] sm:$0xff] }
 0x299   :  { %v5272_v14 = vpack.c.bf16 %v47_v13, %v46_v12 }
 0x29a   :  { %4069 = vmatmul.mubr.msk.f32.vlgmr.msra.gmra.mrb[0].mxu1 %vm166_vm4, %v5185_v17 }
 0x29b   :  { %4099 = vmatprep.mubr.msk.f32.mxu1 %vm5119_vm0, %v5118_v0  ;;  %4663 = vmatpush3.bf16.msra.mxu1 %v5197_v25 }
 0x29c   :  { %4664 = vmatprep.subr.bf16.mxu1 %v5122_v24  ;;  %4690 = vmatpush3.bf16.msra.mxu0 %v5272_v14 }
 0x29d   :  { %4691 = vmatprep.subr.bf16.mxu0 %v5122_v24 }
 0x29f   :  { %4666 = vmatpush3.bf16.msra.mxu1 %v5201_v27 }
 0x2a0   :  { %4667 = vmatprep.subr.bf16.mxu1 %v5122_v24 }
 0x2a3   :  { %4669 = vmatpush3.bf16.msra.mxu1 %v5206_v32 }
 0x2a4   :  { %4670 = vmatprep.subr.bf16.mxu1 %v5122_v24 }
 0x2a7   :  { %4672 = vmatpush3.bf16.msra.mxu1 %v5215_v35 }
 0x2a8   :  { %4673 = vmatprep.subr.bf16.mxu1 %v5122_v24 }
 0x2ab   :  { %4675 = vmatpush3.bf16.msra.mxu1 %v5221_v38 }
 0x2ac   :  { %4676 = vmatprep.subr.bf16.mxu1 %v5122_v24 }
 0x2af   :  { %4678 = vmatpush3.bf16.msra.mxu1 %v5225_v41 }
 0x2b0   :  { %4679 = vmatprep.subr.bf16.mxu1 %v5122_v24 }
 0x2b3   :  { %4681 = vmatpush3.bf16.msra.mxu1 %v5230_v44 }
 0x2b4   :  { %4136 = vmatprep.subr.mxu1 %v5118_v0 }
 0x36d   :  { %v236_v18 = vpop.f32.mrb[0].mxu1 }
 0x36e   :  { %v241_v19 = vrot.slane %v236_v18, 1  ;;  %v4070_v20 = vpop.f32.mrb[1].mxu1 }
 0x36f   :  { %v51_v20 = vld [vmem:[#allocation2 + $0xb8] sm:$0xff] }
 0x370   :  { %242 = vrot.lane.b32.xlu1 %v241_v19, %s5121_s5  ;;  %v50_v19 = vld [vmem:[#allocation2 + $0xb0] sm:$0xff] }
 0x371   :  { %v5281_v21 = vpack.c.bf16 %v51_v20, %v50_v19 }
 0x3e2   :  { %v243_v30 = vpop.permute.xlu1 %242 }
 0x3e3   :  { %v245_v31 = vsel %vm76_vm1, %v236_v18, %v243_v30  ;;  %v5276_v18 = vpack.c.bf16 %v49_v16, %v48_v15 }
 0x3e4   :  { %247 = vrot.lane.b32.xlu1 %v245_v31, %s5117_s23  ;;  %529 = vst.msk [vmem:[%s5996_s3] sm:$0x1] %vm528_vm6, %v245_v31 }
 0x3e5   :  { %4693 = vmatpush3.bf16.msra.mxu0 %v5276_v18 }
 0x3e6   :  { %4694 = vmatprep.subr.bf16.mxu0 %v5122_v24 }
 0x3e8   :  { %255 = vrot.lane.b32.xlu1 %v5170_v1, %s5123_s8 }
 0x3e9   :  { %4696 = vmatpush3.bf16.msra.mxu0 %v5281_v21 }
 0x3ea   :  { %4697 = vmatprep.subr.bf16.mxu0 %v5122_v24 }
 0x456   :  { %v248_v48 = vpop.permute.xlu1 %247 }
 0x457   :  { %v250_v49 = vsel %vm166_vm4, %v5237_v47, %v248_v48 }
 0x458   :  { %252 = vrot.lane.b32.xlu1 %v250_v49, %s5124_s11 }
 0x45a   :  { %v256_v51 = vpop.permute.xlu1 %255 }
 0x45c   :  { %259 = vrot.lane.b32.xlu1 %v5243_v50, %s5125_s12 }
 0x4ca   :  { %v5249_v53 = vpop.permute.xlu1 %252 }
 0x4cb   :  { %v263_v54 = vsel %vm262_vm8, %v66_v52, %v5249_v53 }
 0x4cc   :  { %v265_v55 = vsel %vm264_vm9, %v263_v54, %v256_v51 }
 0x4ce   :  { %v5254_v56 = vpop.permute.xlu1 %259 }
 0x4cf   :  { %v267_v57 = vsel %vm266_vm10, %v265_v55, %v5254_v56 }
 0x4d0   :  { %4100 = vmatmul.mubr.msk.f32.vlgmr.msra.gmra.mrb[2].mxu1 %vm268_vm11, %v267_v57 }
 0x4d1   :  { %4138 = vmatprep.mubr.msk.f32.mxu1 %vm5119_vm0, %v5118_v0 }
 0x5a3   :  { %v338_v58 = vpop.f32.mrb[2].mxu1 }
 0x5a4   :  { %349 = vrot.lane.b32.xlu0 %v338_v58, %s5124_s11  ;;  %v4101_v59 = vpop.f32.mrb[3].mxu1  ;;  %v3729_v60 = vmul.f32 -1.442695, %v338_v58 }
 0x5a6   :  { %5014 = vpow2.f32 %v3729_v60 }
 0x5b0   :  { %v5015_v61 = vpop.eup %5014 }
 0x5b1   :  { %v345_v62 = vadd.f32 1.0, %v5015_v61 }
 0x5b3   :  { %5016 = vrcp.f32 %v345_v62 }
 0x5bd   :  { %v5017_v63 = vpop.eup %5016 }
 0x5be   :  { %v359_v23 = vsub.f32 1.0, %v5017_v63 }
 0x616   :  { %v350_v1 = vpop.permute.xlu0 %349 }
 0x617   :  { %v352_v2 = vmul.f32 %v5017_v63, %v350_v1 }
 0x619   :  { %354 = vrot.lane.b32.xlu1 %v352_v2, %s5126_s2 }
 0x68b   :  { %v355_v3 = vpop.permute.xlu1 %354 }
 0x68c   :  { %v357_v4 = vadd.f32 %v355_v3, %v338_v58 }
 0x68e   :  { %5018 = vtanh.f32 %v357_v4 }
 0x698   :  { %v5019_v5 = vpop.eup %5018 }
 0x699   :  { %361 = vrot.lane.b32.xlu1 %v5019_v5, %s5127_s15 }
 0x69d   :  { %366 = vrot.lane.b32.xlu1 %v66_v52, %s5124_s11 }
 0x70b   :  { %v362_v22 = vpop.permute.xlu1 %361 }
 0x70c   :  { %v364_v28 = vmul.f32 %v362_v22, %v359_v23 }
 0x70f   :  { %v367_v26 = vpop.permute.xlu1 %366 }
 0x710   :  { %v369_v29 = vmul.f32 %v5017_v63, %v367_v26 }
 0x712   :  { %v5285_v30 = vadd.f32 %v369_v29, %v364_v28 }
 0x714   :  { %372 = vrot.lane.b32.xlu1 %v5285_v30, %s5127_s15 }
 0x718   :  { %375 = vrot.lane.b32.xlu1 %v5243_v50, %s5123_s8  ;;  %v541_v50 = vld [vmem:[%s5993_s0 + $0x8] sm:$0xff] }
 0x719   :  { %4137 = vmatpush3.xpose.msk.msra.mxu1 %vm76_vm1, %v541_v50 }
 0x71a   :  { %4703 = vmatprep.subr.bf16.mxu1 %v5122_v24 }
 0x786   :  { %v5291_v31 = vpop.permute.xlu1 %372 }
 0x787   :  { %v378_v37 = vsel %vm262_vm8, %v5291_v31, %v5249_v53 }
 0x78a   :  { %v5298_v39 = vpop.permute.xlu1 %375 }
 0x78b   :  { %v379_v40 = vsel %vm264_vm9, %v378_v37, %v5298_v39 }
 0x78c   :  { %4123 = vmatmul.mubr.msk.f32.vlgmr.msra.gmra.mrb[2].mxu0 %vm380_vm12, %v379_v40 }
 0x78d   :  { %4699 = vmatpush3.bf16.msra.mxu0 %v5293_v36  ;;  %4133 = vmatprep.mubr.msk.f32.mxu0 %vm5119_vm0, %v5118_v0 }
 0x78e   :  { %4700 = vmatprep.subr.bf16.mxu0 %v5122_v24 }
 0x791   :  { %4702 = vmatpush3.bf16.msra.mxu0 %v5307_v45 }
 0x792   :  { %4141 = vmatprep.subr.mxu0 %v5118_v0 }
 0x85f   :  { %v450_v46 = vpop.f32.mrb[2].mxu0 }
 0x860   :  { %v454_v48 = vmax.f32 %v450_v46, 0.0  ;;  %v4124_v49 = vpop.f32.mrb[3].mxu0 }
 0x862   :  { %4134 = vmatmul.mubr.msk.f32.vlgmr.msra.gmra.mrb[4].mxu0 %vm262_vm8, %v454_v48 }
 0x863   :  { %4143 = vmatprep.mubr.msk.f32.mxu0 %vm5119_vm0, %v5118_v0  ;;  %4142 = vmatpush3.msra.mxu0 %v541_v50 }
 0x864   :  { %4724 = vmatprep.subr.bf16.mxu0 %v5122_v24 }
 0x935   :  { %v524_v51 = vpop.f32.mrb[4].mxu0 }
 0x936   :  { %v543_v52 = vrot.slane %v524_v51, 7  ;;  %v4135_v53 = vpop.f32.mrb[5].mxu0 }
 0x938   :  { %544 = vrot.lane.b32.xlu0 %v543_v52, %s5120_s29 }
 0x9aa   :  { %v545_v54 = vpop.permute.xlu0 %544 }
 0x9ab   :  { %v547_v55 = vsel %vm74_vm2, %v524_v51, %v545_v54 }
 0x9ac   :  { %4139 = vmatmul.mubr.msk.f32.vlgmr.msra.gmra.mrb[4].mxu1 %vm76_vm1, %v547_v55 }
 0x9ad   :  { %4705 = vmatpush3.bf16.msra.mxu1 %v5197_v25  ;;  %4174 = vmatprep.mubr.msk.f32.mxu1 %vm5119_vm0, %v5118_v0 }
 0x9ae   :  { %4706 = vmatprep.subr.bf16.mxu1 %v5122_v24 }
 0x9b1   :  { %4708 = vmatpush3.bf16.msra.mxu1 %v5201_v27 }
 0x9b2   :  { %4709 = vmatprep.subr.bf16.mxu1 %v5122_v24 }
 0x9b5   :  { %4711 = vmatpush3.bf16.msra.mxu1 %v5206_v32 }
 0x9b6   :  { %4712 = vmatprep.subr.bf16.mxu1 %v5122_v24 }
 0x9b9   :  { %4714 = vmatpush3.bf16.msra.mxu1 %v5215_v35 }
 0x9ba   :  { %4715 = vmatprep.subr.bf16.mxu1 %v5122_v24 }
 0x9bd   :  { %4717 = vmatpush3.bf16.msra.mxu1 %v5221_v38 }
 0x9be   :  { %4718 = vmatprep.subr.bf16.mxu1 %v5122_v24 }
 0x9c1   :  { %4720 = vmatpush3.bf16.msra.mxu1 %v5225_v41 }
 0x9c2   :  { %4721 = vmatprep.subr.bf16.mxu1 %v5122_v24 }
 0x9c5   :  { %4723 = vmatpush3.bf16.msra.mxu1 %v5230_v44 }
 0x9c6   :  { %4211 = vmatprep.subr.mxu1 %v5118_v0 }
 0xa7f   :  { %v620_v57 = vpop.f32.mrb[4].mxu1 }
 0xa80   :  { %v624_v58 = vmul.f32 0.25, %v620_v57  ;;  %v4140_v59 = vpop.f32.mrb[5].mxu1 }
 0xa82   :  { %v625_v60 = vsel %vm154_vm3, %v624_v58, -inf }
 0xa83   :  { %626 = vmax.xlane.f32.xlu1 %v625_v60 }
 0xb10   :  { %v627_v61 = vpop.xlane.xlu1 %626 }
 0xb11   :  { %v628_v62 = vsub.f32 %v624_v58, %v627_v61  ;;  %v994_v61 = vld [vmem:[%s5993_s0 + $0x10] sm:$0xff] }
 0xb13   :  { %v629_v63 = vmul.f32 1.442695, %v628_v62 }
 0xb15   :  { %5020 = vpow2.f32 %v629_v63 }
 0xb1f   :  { %v5021_v1 = vpop.eup %5020 }
 0xb20   :  { %v631_v2 = vsel %vm154_vm3, %v5021_v1, 0.0 }
 0xb21   :  { %632 = vadd.xlane.f32.xlu0 %v631_v2 }
 0xbae   :  { %v633_v3 = vpop.xlane.xlu0 %632 }
 0xbaf   :  { %5022 = vrcp.f32 %v633_v3 }
 0xbb9   :  { %v5023_v4 = vpop.eup %5022 }
 0xbba   :  { %v5341_v5 = vmul.f32 %v5023_v4, %v5021_v1 }
 0xbbc   :  { %4144 = vmatmul.mubr.msk.f32.vlgmr.msra.gmra.mrb[6].mxu0 %vm166_vm4, %v5341_v5 }
 0xbbd   :  { %4726 = vmatpush3.bf16.msra.mxu0 %v5264_v9  ;;  %4197 = vmatprep.mubr.msk.f32.mxu0 %vm5119_vm0, %v5118_v0 }
 0xbbe   :  { %4727 = vmatprep.subr.bf16.mxu0 %v5122_v24 }
 0xbc1   :  { %4729 = vmatpush3.bf16.msra.mxu0 %v5267_v11 }
 0xbc2   :  { %4730 = vmatprep.subr.bf16.mxu0 %v5122_v24 }
 0xbc5   :  { %4732 = vmatpush3.bf16.msra.mxu0 %v5272_v14 }
 0xbc6   :  { %4733 = vmatprep.subr.bf16.mxu0 %v5122_v24 }
 0xbc9   :  { %4735 = vmatpush3.bf16.msra.mxu0 %v5276_v18 }
 0xbca   :  { %4736 = vmatprep.subr.bf16.mxu0 %v5122_v24 }
 0xbcd   :  { %4738 = vmatpush3.bf16.msra.mxu0 %v5281_v21 }
 0xbce   :  { %4739 = vmatprep.subr.bf16.mxu0 %v5122_v24 }
 0xc8f   :  { %v705_v6 = vpop.f32.mrb[6].mxu0 }
 0xc90   :  { %v710_v7 = vrot.slane %v705_v6, 1  ;;  %v4145_v8 = vpop.f32.mrb[7].mxu0 }
 0xc92   :  { %711 = vrot.lane.b32.xlu0 %v710_v7, %s5121_s5 }
 0xc96   :  { %726 = vrot.lane.b32.xlu0 %v524_v51, %s5123_s8 }
 0xd04   :  { %v712_v10 = vpop.permute.xlu0 %711 }
 0xd05   :  { %v714_v12 = vsel %vm76_vm1, %v705_v6, %v712_v10 }
 0xd06   :  { %983 = vst.msk [vmem:[%s5996_s3 + $0x1] sm:$0x1] %vm528_vm6, %v714_v12  ;;  %v716_v13 = vrot.slane %v714_v12, 7 }
 0xd08   :  { %717 = vrot.lane.b32.xlu1 %v716_v13, %s5117_s23  ;;  %v727_v22 = vpop.permute.xlu0 %726 }
 0xd7a   :  { %v718_v15 = vpop.permute.xlu1 %717 }
 0xd7b   :  { %v720_v16 = vsel %vm166_vm4, %v5237_v47, %v718_v15 }
 0xd7c   :  { %v722_v19 = vrot.slane %v720_v16, 1 }
 0xd7e   :  { %723 = vrot.lane.b32.xlu1 %v722_v19, %s5124_s11 }
 0xdf0   :  { %v724_v20 = vpop.permute.xlu1 %723 }
 0xdf1   :  { %v729_v23 = vsel %vm262_vm8, %v5291_v31, %v724_v20 }
 0xdf2   :  { %v730_v26 = vsel %vm264_vm9, %v729_v23, %v727_v22 }
 0xdf3   :  { %v731_v28 = vsel %vm266_vm10, %v730_v26, %v5254_v56 }
 0xdf4   :  { %4175 = vmatmul.mubr.msk.f32.vlgmr.msra.gmra.mrb[6].mxu1 %vm268_vm11, %v731_v28 }
 0xdf5   :  { %4213 = vmatprep.mubr.msk.f32.mxu1 %vm5119_vm0, %v5118_v0  ;;  %4212 = vmatpush3.xpose.msk.msra.mxu1 %vm76_vm1, %v994_v61 }
 0xdf6   :  { %4745 = vmatprep.subr.bf16.mxu1 %v5122_v24 }
 0xec7   :  { %v801_v29 = vpop.f32.mrb[6].mxu1 }
 0xec8   :  { %812 = vrot.lane.b32.xlu1 %v801_v29, %s5124_s11  ;;  %v4176_v33 = vpop.f32.mrb[7].mxu1  ;;  %v3736_v34 = vmul.f32 -1.442695, %v801_v29 }
 0xeca   :  { %5024 = vpow2.f32 %v3736_v34 }
 0xed4   :  { %v5025_v37 = vpop.eup %5024 }
 0xed5   :  { %v808_v40 = vadd.f32 1.0, %v5025_v37 }
 0xed7   :  { %5026 = vrcp.f32 %v808_v40 }
 0xee1   :  { %v5027_v31 = vpop.eup %5026 }
 0xee2   :  { %v822_v50 = vsub.f32 1.0, %v5027_v31  ;;  %v828_v52 = vmul.f32 %v5027_v31, %v5285_v30 }
 0xf3a   :  { %v813_v42 = vpop.permute.xlu1 %812 }
 0xf3b   :  { %v815_v43 = vmul.f32 %v5027_v31, %v813_v42 }
 0xf3d   :  { %817 = vrot.lane.b32.xlu0 %v815_v43, %s5126_s2 }
 0xfaf   :  { %v818_v46 = vpop.permute.xlu0 %817 }
 0xfb0   :  { %v820_v48 = vadd.f32 %v818_v46, %v801_v29 }
 0xfb2   :  { %5028 = vtanh.f32 %v820_v48 }
 0xfbc   :  { %v5029_v49 = vpop.eup %5028 }
 0xfbd   :  { %824 = vrot.lane.b32.xlu1 %v5029_v49, %s5127_s15 }
0x102f   :  { %v825_v51 = vpop.permute.xlu1 %824 }
0x1030   :  { %v827_v53 = vmul.f32 %v825_v51, %v822_v50 }
0x1032   :  { %v5380_v54 = vadd.f32 %v828_v52, %v827_v53 }
0x1034   :  { %831 = vrot.lane.b32.xlu0 %v5380_v54, %s5127_s15 }
0x10a6   :  { %v5384_v55 = vpop.permute.xlu0 %831 }
0x10a7   :  { %v834_v57 = vsel %vm262_vm8, %v5384_v55, %v724_v20 }
0x10a8   :  { %v835_v58 = vsel %vm264_vm9, %v834_v57, %v5298_v39 }
0x10a9   :  { %4198 = vmatmul.mubr.msk.f32.vlgmr.msra.gmra.mrb[8].mxu0 %vm380_vm12, %v835_v58 }
0x10aa   :  { %4741 = vmatpush3.bf16.msra.mxu0 %v5293_v36  ;;  %4208 = vmatprep.mubr.msk.f32.mxu0 %vm5119_vm0, %v5118_v0 }
0x10ab   :  { %4742 = vmatprep.subr.bf16.mxu0 %v5122_v24 }
0x10ae   :  { %4744 = vmatpush3.bf16.msra.mxu0 %v5307_v45 }
0x10af   :  { %4216 = vmatprep.subr.mxu0 %v5118_v0 }
0x117c   :  { %v905_v30 = vpop.f32.mrb[8].mxu0 }
0x117d   :  { %v909_v59 = vmax.f32 %v905_v30, 0.0  ;;  %v4199_v60 = vpop.f32.mrb[9].mxu0 }
0x117f   :  { %4209 = vmatmul.mubr.msk.f32.vlgmr.msra.gmra.mrb[10].mxu0 %vm262_vm8, %v909_v59 }
0x1180   :  { %4218 = vmatprep.mubr.msk.f32.mxu0 %vm5119_vm0, %v5118_v0  ;;  %4217 = vmatpush3.msra.mxu0 %v994_v61 }
0x1181   :  { %4766 = vmatprep.subr.bf16.mxu0 %v5122_v24 }
0x1252   :  { %v979_v62 = vpop.f32.mrb[10].mxu0 }
0x1253   :  { %v996_v63 = vrot.slane %v979_v62, 7  ;;  %v4210_v1 = vpop.f32.mrb[11].mxu0 }
0x1255   :  { %997 = vrot.lane.b32.xlu1 %v996_v63, %s5120_s29 }
0x12c7   :  { %v998_v2 = vpop.permute.xlu1 %997 }
0x12c8   :  { %v1000_v3 = vsel %vm74_vm2, %v979_v62, %v998_v2 }
0x12c9   :  { %4214 = vmatmul.mubr.msk.f32.vlgmr.msra.gmra.mrb[8].mxu1 %vm76_vm1, %v1000_v3 }
0x12ca   :  { %4747 = vmatpush3.bf16.msra.mxu1 %v5197_v25  ;;  %4249 = vmatprep.mubr.msk.f32.mxu1 %vm5119_vm0, %v5118_v0 }
0x12cb   :  { %4748 = vmatprep.subr.bf16.mxu1 %v5122_v24 }
0x12ce   :  { %4750 = vmatpush3.bf16.msra.mxu1 %v5201_v27 }
0x12cf   :  { %4751 = vmatprep.subr.bf16.mxu1 %v5122_v24 }
0x12d2   :  { %4753 = vmatpush3.bf16.msra.mxu1 %v5206_v32 }
0x12d3   :  { %4754 = vmatprep.subr.bf16.mxu1 %v5122_v24 }
0x12d6   :  { %4756 = vmatpush3.bf16.msra.mxu1 %v5215_v35 }
0x12d7   :  { %4757 = vmatprep.subr.bf16.mxu1 %v5122_v24 }
0x12da   :  { %4759 = vmatpush3.bf16.msra.mxu1 %v5221_v38 }
0x12db   :  { %4760 = vmatprep.subr.bf16.mxu1 %v5122_v24 }
0x12de   :  { %4762 = vmatpush3.bf16.msra.mxu1 %v5225_v41 }
0x12df   :  { %4763 = vmatprep.subr.bf16.mxu1 %v5122_v24 }
0x12e2   :  { %4765 = vmatpush3.bf16.msra.mxu1 %v5230_v44 }
0x12e3   :  { %4286 = vmatprep.subr.mxu1 %v5118_v0 }
0x139c   :  { %v1073_v4 = vpop.f32.mrb[8].mxu1 }
0x139d   :  { %v1077_v6 = vmul.f32 0.25, %v1073_v4  ;;  %v4215_v7 = vpop.f32.mrb[9].mxu1 }
0x139f   :  { %v1078_v8 = vsel %vm154_vm3, %v1077_v6, -inf }
0x13a0   :  { %1079 = vmax.xlane.f32.xlu0 %v1078_v8 }
0x142d   :  { %v1080_v10 = vpop.xlane.xlu0 %1079 }
0x142e   :  { %v1081_v12 = vsub.f32 %v1077_v6, %v1080_v10 }
0x1430   :  { %v1082_v13 = vmul.f32 1.442695, %v1081_v12  ;;  %v1447_v12 = vld [vmem:[%s5993_s0 + $0x18] sm:$0xff] }
0x1432   :  { %5030 = vpow2.f32 %v1082_v13 }
0x143c   :  { %v5031_v15 = vpop.eup %5030 }
0x143d   :  { %v1084_v16 = vsel %vm154_vm3, %v5031_v15, 0.0 }
0x143e   :  { %1085 = vadd.xlane.f32.xlu1 %v1084_v16 }
0x14cb   :  { %v1086_v19 = vpop.xlane.xlu1 %1085 }
0x14cc   :  { %5032 = vrcp.f32 %v1086_v19 }
0x14d6   :  { %v5033_v20 = vpop.eup %5032 }
0x14d7   :  { %v5427_v22 = vmul.f32 %v5033_v20, %v5031_v15 }
0x14d9   :  { %4219 = vmatmul.mubr.msk.f32.vlgmr.msra.gmra.mrb[12].mxu0 %vm166_vm4, %v5427_v22 }
0x14da   :  { %4768 = vmatpush3.bf16.msra.mxu0 %v5264_v9  ;;  %4272 = vmatprep.mubr.msk.f32.mxu0 %vm5119_vm0, %v5118_v0 }
0x14db   :  { %4769 = vmatprep.subr.bf16.mxu0 %v5122_v24 }
0x14de   :  { %4771 = vmatpush3.bf16.msra.mxu0 %v5267_v11 }
0x14df   :  { %4772 = vmatprep.subr.bf16.mxu0 %v5122_v24 }
0x14e2   :  { %4774 = vmatpush3.bf16.msra.mxu0 %v5272_v14 }
0x14e3   :  { %4775 = vmatprep.subr.bf16.mxu0 %v5122_v24 }
0x14e6   :  { %4777 = vmatpush3.bf16.msra.mxu0 %v5276_v18 }
0x14e7   :  { %4778 = vmatprep.subr.bf16.mxu0 %v5122_v24 }
0x14ea   :  { %4780 = vmatpush3.bf16.msra.mxu0 %v5281_v21 }
0x14eb   :  { %4781 = vmatprep.subr.bf16.mxu0 %v5122_v24 }
0x15ac   :  { %v1158_v23 = vpop.f32.mrb[12].mxu0 }
0x15ad   :  { %v1163_v26 = vrot.slane %v1158_v23, 1  ;;  %v4220_v28 = vpop.f32.mrb[13].mxu0 }
0x15af   :  { %1164 = vrot.lane.b32.xlu0 %v1163_v26, %s5121_s5 }
0x1621   :  { %v1165_v29 = vpop.permute.xlu0 %1164 }
0x1622   :  { %v1167_v33 = vsel %vm76_vm1, %v1158_v23, %v1165_v29 }
0x1623   :  { %1436 = vst.msk [vmem:[%s5996_s3 + $0x2] sm:$0x1] %vm528_vm6, %v1167_v33  ;;  %v1169_v34 = vrot.slane %v1167_v33, 6 }
0x1625   :  { %1170 = vrot.lane.b32.xlu1 %v1169_v34, %s5117_s23 }
0x1629   :  { %1179 = vrot.lane.b32.xlu1 %v979_v62, %s5123_s8 }
0x1697   :  { %v1171_v37 = vpop.permute.xlu1 %1170 }
0x1698   :  { %v1173_v40 = vsel %vm166_vm4, %v5237_v47, %v1171_v37 }
0x1699   :  { %v1175_v31 = vrot.slane %v1173_v40, 2 }
0x169b   :  { %1176 = vrot.lane.b32.xlu0 %v1175_v31, %s5124_s11  ;;  %v1180_v43 = vpop.permute.xlu1 %1179 }
0x170d   :  { %v1177_v42 = vpop.permute.xlu0 %1176 }
0x170e   :  { %v1182_v46 = vsel %vm262_vm8, %v5384_v55, %v1177_v42 }
0x170f   :  { %v1183_v48 = vsel %vm264_vm9, %v1182_v46, %v1180_v43 }
0x1710   :  { %v1184_v49 = vsel %vm266_vm10, %v1183_v48, %v5254_v56 }
0x1711   :  { %4250 = vmatmul.mubr.msk.f32.vlgmr.msra.gmra.mrb[10].mxu1 %vm268_vm11, %v1184_v49 }
0x1712   :  { %4288 = vmatprep.mubr.msk.f32.mxu1 %vm5119_vm0, %v5118_v0  ;;  %4287 = vmatpush3.xpose.msk.msra.mxu1 %vm76_vm1, %v1447_v12 }
0x1713   :  { %4787 = vmatprep.subr.bf16.mxu1 %v5122_v24 }
0x17e4   :  { %v1254_v50 = vpop.f32.mrb[10].mxu1 }
0x17e5   :  { %1265 = vrot.lane.b32.xlu0 %v1254_v50, %s5124_s11  ;;  %v4251_v51 = vpop.f32.mrb[11].mxu1  ;;  %v3743_v52 = vmul.f32 -1.442695, %v1254_v50 }
0x17e7   :  { %5034 = vpow2.f32 %v3743_v52 }
0x17f1   :  { %v5035_v53 = vpop.eup %5034 }
0x17f2   :  { %v1261_v57 = vadd.f32 1.0, %v5035_v53 }
0x17f4   :  { %5036 = vrcp.f32 %v1261_v57 }
0x17fe   :  { %v5037_v55 = vpop.eup %5036 }
0x17ff   :  { %v1275_v62 = vsub.f32 1.0, %v5037_v55  ;;  %v1281_v1 = vmul.f32 %v5037_v55, %v5380_v54 }
0x1857   :  { %v1266_v58 = vpop.permute.xlu0 %1265 }
0x1858   :  { %v1268_v30 = vmul.f32 %v5037_v55, %v1266_v58 }
0x185a   :  { %1270 = vrot.lane.b32.xlu1 %v1268_v30, %s5126_s2 }
0x18cc   :  { %v1271_v59 = vpop.permute.xlu1 %1270 }
0x18cd   :  { %v1273_v60 = vadd.f32 %v1271_v59, %v1254_v50 }
0x18cf   :  { %5038 = vtanh.f32 %v1273_v60 }
0x18d9   :  { %v5039_v61 = vpop.eup %5038 }
0x18da   :  { %1277 = vrot.lane.b32.xlu0 %v5039_v61, %s5127_s15 }
0x194c   :  { %v1278_v63 = vpop.permute.xlu0 %1277 }
0x194d   :  { %v1280_v2 = vmul.f32 %v1278_v63, %v1275_v62 }
0x194f   :  { %v5466_v3 = vadd.f32 %v1281_v1, %v1280_v2 }
0x1951   :  { %1284 = vrot.lane.b32.xlu1 %v5466_v3, %s5127_s15 }
0x19c3   :  { %v5470_v4 = vpop.permute.xlu1 %1284 }
0x19c4   :  { %v1287_v6 = vsel %vm262_vm8, %v5470_v4, %v1177_v42 }
0x19c5   :  { %v1288_v7 = vsel %vm264_vm9, %v1287_v6, %v5298_v39 }
0x19c6   :  { %4273 = vmatmul.mubr.msk.f32.vlgmr.msra.gmra.mrb[14].mxu0 %vm380_vm12, %v1288_v7 }
0x19c7   :  { %4783 = vmatpush3.bf16.msra.mxu0 %v5293_v36  ;;  %4283 = vmatprep.mubr.msk.f32.mxu0 %vm5119_vm0, %v5118_v0 }
0x19c8   :  { %4784 = vmatprep.subr.bf16.mxu0 %v5122_v24 }
0x19cb   :  { %4786 = vmatpush3.bf16.msra.mxu0 %v5307_v45 }
0x19cc   :  { %4291 = vmatprep.subr.mxu0 %v5118_v0 }
0x1a99   :  { %v1358_v54 = vpop.f32.mrb[14].mxu0 }
0x1a9a   :  { %v1362_v8 = vmax.f32 %v1358_v54, 0.0  ;;  %v4274_v10 = vpop.f32.mrb[15].mxu0 }
0x1a9c   :  { %4284 = vmatmul.mubr.msk.f32.vlgmr.msra.gmra.mrb[16].mxu0 %vm262_vm8, %v1362_v8 }
0x1a9d   :  { %4293 = vmatprep.mubr.msk.f32.mxu0 %vm5119_vm0, %v5118_v0  ;;  %4292 = vmatpush3.msra.mxu0 %v1447_v12 }
0x1a9e   :  { %4808 = vmatprep.subr.bf16.mxu0 %v5122_v24 }
0x1b6f   :  { %v1432_v13 = vpop.f32.mrb[16].mxu0 }
0x1b70   :  { %v1449_v15 = vrot.slane %v1432_v13, 7  ;;  %v4285_v16 = vpop.f32.mrb[17].mxu0 }
0x1b72   :  { %1450 = vrot.lane.b32.xlu0 %v1449_v15, %s5120_s29 }
0x1be4   :  { %v1451_v19 = vpop.permute.xlu0 %1450 }
0x1be5   :  { %v1453_v20 = vsel %vm74_vm2, %v1432_v13, %v1451_v19 }
0x1be6   :  { %4289 = vmatmul.mubr.msk.f32.vlgmr.msra.gmra.mrb[12].mxu1 %vm76_vm1, %v1453_v20 }
0x1be7   :  { %4789 = vmatpush3.bf16.msra.mxu1 %v5197_v25  ;;  %4324 = vmatprep.mubr.msk.f32.mxu1 %vm5119_vm0, %v5118_v0 }
0x1be8   :  { %4790 = vmatprep.subr.bf16.mxu1 %v5122_v24 }
0x1beb   :  { %4792 = vmatpush3.bf16.msra.mxu1 %v5201_v27 }
0x1bec   :  { %4793 = vmatprep.subr.bf16.mxu1 %v5122_v24 }
0x1bef   :  { %4795 = vmatpush3.bf16.msra.mxu1 %v5206_v32 }
0x1bf0   :  { %4796 = vmatprep.subr.bf16.mxu1 %v5122_v24 }
0x1bf3   :  { %4798 = vmatpush3.bf16.msra.mxu1 %v5215_v35 }
0x1bf4   :  { %4799 = vmatprep.subr.bf16.mxu1 %v5122_v24 }
0x1bf7   :  { %4801 = vmatpush3.bf16.msra.mxu1 %v5221_v38 }
0x1bf8   :  { %4802 = vmatprep.subr.bf16.mxu1 %v5122_v24 }
0x1bfb   :  { %4804 = vmatpush3.bf16.msra.mxu1 %v5225_v41 }
0x1bfc   :  { %4805 = vmatprep.subr.bf16.mxu1 %v5122_v24 }
0x1bff   :  { %4807 = vmatpush3.bf16.msra.mxu1 %v5230_v44 }
0x1c00   :  { %4361 = vmatprep.subr.mxu1 %v5118_v0 }
0x1cb9   :  { %v1526_v23 = vpop.f32.mrb[12].mxu1 }
0x1cba   :  { %v1530_v26 = vmul.f32 0.25, %v1526_v23  ;;  %v4290_v28 = vpop.f32.mrb[13].mxu1 }
0x1cbc   :  { %v1531_v29 = vsel %vm154_vm3, %v1530_v26, -inf }
0x1cbd   :  { %1532 = vmax.xlane.f32.xlu1 %v1531_v29 }
0x1d4a   :  { %v1533_v33 = vpop.xlane.xlu1 %1532 }
0x1d4b   :  { %v1534_v34 = vsub.f32 %v1530_v26, %v1533_v33 }
0x1d4d   :  { %v1535_v37 = vmul.f32 1.442695, %v1534_v34 }
0x1d4f   :  { %5040 = vpow2.f32 %v1535_v37  ;;  %v1900_v37 = vld [vmem:[%s5993_s0 + $0x20] sm:$0xff] }
0x1d59   :  { %v5041_v40 = vpop.eup %5040 }
0x1d5a   :  { %v1537_v31 = vsel %vm154_vm3, %v5041_v40, 0.0 }
0x1d5b   :  { %1538 = vadd.xlane.f32.xlu0 %v1537_v31 }
0x1de8   :  { %v1539_v42 = vpop.xlane.xlu0 %1538 }
0x1de9   :  { %5042 = vrcp.f32 %v1539_v42 }
0x1df3   :  { %v5043_v43 = vpop.eup %5042 }
0x1df4   :  { %v5513_v46 = vmul.f32 %v5043_v43, %v5041_v40 }
0x1df6   :  { %4294 = vmatmul.mubr.msk.f32.vlgmr.msra.gmra.mrb[18].mxu0 %vm166_vm4, %v5513_v46 }
0x1df7   :  { %4810 = vmatpush3.bf16.msra.mxu0 %v5264_v9  ;;  %4347 = vmatprep.mubr.msk.f32.mxu0 %vm5119_vm0, %v5118_v0 }
0x1df8   :  { %4811 = vmatprep.subr.bf16.mxu0 %v5122_v24 }
0x1dfb   :  { %4813 = vmatpush3.bf16.msra.mxu0 %v5267_v11 }
0x1dfc   :  { %4814 = vmatprep.subr.bf16.mxu0 %v5122_v24 }
0x1dff   :  { %4816 = vmatpush3.bf16.msra.mxu0 %v5272_v14 }
0x1e00   :  { %4817 = vmatprep.subr.bf16.mxu0 %v5122_v24 }
0x1e03   :  { %4819 = vmatpush3.bf16.msra.mxu0 %v5276_v18 }
0x1e04   :  { %4820 = vmatprep.subr.bf16.mxu0 %v5122_v24 }
0x1e07   :  { %4822 = vmatpush3.bf16.msra.mxu0 %v5281_v21 }
0x1e08   :  { %4823 = vmatprep.subr.bf16.mxu0 %v5122_v24 }
0x1ec9   :  { %v1611_v48 = vpop.f32.mrb[18].mxu0 }
0x1eca   :  { %v1616_v49 = vrot.slane %v1611_v48, 1  ;;  %v4295_v50 = vpop.f32.mrb[19].mxu0 }
0x1ecc   :  { %1617 = vrot.lane.b32.xlu0 %v1616_v49, %s5121_s5 }
0x1ed0   :  { %1632 = vrot.lane.b32.xlu0 %v1432_v13, %s5123_s8 }
0x1f3e   :  { %v1618_v51 = vpop.permute.xlu0 %1617 }
0x1f3f   :  { %v1620_v52 = vsel %vm76_vm1, %v1611_v48, %v1618_v51 }
0x1f40   :  { %1889 = vst.msk [vmem:[%s5996_s3 + $0x3] sm:$0x1] %vm528_vm6, %v1620_v52  ;;  %v1622_v53 = vrot.slane %v1620_v52, 5 }
0x1f42   :  { %1623 = vrot.lane.b32.xlu1 %v1622_v53, %s5117_s23  ;;  %v1633_v59 = vpop.permute.xlu0 %1632 }
0x1fb4   :  { %v1624_v57 = vpop.permute.xlu1 %1623 }
0x1fb5   :  { %v1626_v55 = vsel %vm166_vm4, %v5237_v47, %v1624_v57 }
0x1fb6   :  { %v1628_v58 = vrot.slane %v1626_v55, 3 }
0x1fb8   :  { %1629 = vrot.lane.b32.xlu1 %v1628_v58, %s5124_s11 }
0x202a   :  { %v1630_v30 = vpop.permute.xlu1 %1629 }
0x202b   :  { %v1635_v60 = vsel %vm262_vm8, %v5470_v4, %v1630_v30 }
0x202c   :  { %v1636_v61 = vsel %vm264_vm9, %v1635_v60, %v1633_v59 }
0x202d   :  { %v1637_v62 = vsel %vm266_vm10, %v1636_v61, %v5254_v56 }
0x202e   :  { %4325 = vmatmul.mubr.msk.f32.vlgmr.msra.gmra.mrb[14].mxu1 %vm268_vm11, %v1637_v62 }
0x202f   :  { %4363 = vmatprep.mubr.msk.f32.mxu1 %vm5119_vm0, %v5118_v0  ;;  %4362 = vmatpush3.xpose.msk.msra.mxu1 %vm76_vm1, %v1900_v37 }
0x2030   :  { %4829 = vmatprep.subr.bf16.mxu1 %v5122_v24 }
0x2101   :  { %v1707_v63 = vpop.f32.mrb[14].mxu1 }
0x2102   :  { %1718 = vrot.lane.b32.xlu1 %v1707_v63, %s5124_s11  ;;  %v4326_v1 = vpop.f32.mrb[15].mxu1  ;;  %v3750_v2 = vmul.f32 -1.442695, %v1707_v63 }
0x2104   :  { %5044 = vpow2.f32 %v3750_v2 }
0x210e   :  { %v5045_v6 = vpop.eup %5044 }
0x210f   :  { %v1714_v7 = vadd.f32 1.0, %v5045_v6 }
0x2111   :  { %5046 = vrcp.f32 %v1714_v7 }
0x211b   :  { %v5047_v4 = vpop.eup %5046 }
0x211c   :  { %v1728_v15 = vsub.f32 1.0, %v5047_v4  ;;  %v1734_v19 = vmul.f32 %v5047_v4, %v5466_v3 }
0x2174   :  { %v1719_v54 = vpop.permute.xlu1 %1718 }
0x2175   :  { %v1721_v8 = vmul.f32 %v5047_v4, %v1719_v54 }
0x2177   :  { %1723 = vrot.lane.b32.xlu0 %v1721_v8, %s5126_s2 }
0x21e9   :  { %v1724_v10 = vpop.permute.xlu0 %1723 }
0x21ea   :  { %v1726_v12 = vadd.f32 %v1724_v10, %v1707_v63 }
0x21ec   :  { %5048 = vtanh.f32 %v1726_v12 }
0x21f6   :  { %v5049_v13 = vpop.eup %5048 }
0x21f7   :  { %1730 = vrot.lane.b32.xlu1 %v5049_v13, %s5127_s15 }
0x2269   :  { %v1731_v16 = vpop.permute.xlu1 %1730 }
0x226a   :  { %v1733_v20 = vmul.f32 %v1731_v16, %v1728_v15 }
0x226c   :  { %v5552_v23 = vadd.f32 %v1734_v19, %v1733_v20 }
0x226e   :  { %1737 = vrot.lane.b32.xlu0 %v5552_v23, %s5127_s15 }
0x22e0   :  { %v5556_v26 = vpop.permute.xlu0 %1737 }
0x22e1   :  { %v1740_v28 = vsel %vm262_vm8, %v5556_v26, %v1630_v30 }
0x22e2   :  { %v1741_v29 = vsel %vm264_vm9, %v1740_v28, %v5298_v39 }
0x22e3   :  { %4348 = vmatmul.mubr.msk.f32.vlgmr.msra.gmra.mrb[20].mxu0 %vm380_vm12, %v1741_v29 }
0x22e4   :  { %4825 = vmatpush3.bf16.msra.mxu0 %v5293_v36  ;;  %4358 = vmatprep.mubr.msk.f32.mxu0 %vm5119_vm0, %v5118_v0 }
0x22e5   :  { %4826 = vmatprep.subr.bf16.mxu0 %v5122_v24 }
0x22e8   :  { %4828 = vmatpush3.bf16.msra.mxu0 %v5307_v45 }
0x22e9   :  { %4366 = vmatprep.subr.mxu0 %v5118_v0 }
0x23b6   :  { %v1811_v3 = vpop.f32.mrb[20].mxu0 }
0x23b7   :  { %v1815_v33 = vmax.f32 %v1811_v3, 0.0  ;;  %v4349_v34 = vpop.f32.mrb[21].mxu0 }
0x23b9   :  { %4359 = vmatmul.mubr.msk.f32.vlgmr.msra.gmra.mrb[22].mxu0 %vm262_vm8, %v1815_v33 }
0x23ba   :  { %4368 = vmatprep.mubr.msk.f32.mxu0 %vm5119_vm0, %v5118_v0  ;;  %4367 = vmatpush3.msra.mxu0 %v1900_v37 }
0x23bb   :  { %4850 = vmatprep.subr.bf16.mxu0 %v5122_v24 }
0x248c   :  { %v1885_v40 = vpop.f32.mrb[22].mxu0 }
0x248d   :  { %v1902_v31 = vrot.slane %v1885_v40, 7  ;;  %v4360_v42 = vpop.f32.mrb[23].mxu0 }
0x248f   :  { %1903 = vrot.lane.b32.xlu1 %v1902_v31, %s5120_s29 }
0x2501   :  { %v1904_v43 = vpop.permute.xlu1 %1903 }
0x2502   :  { %v1906_v48 = vsel %vm74_vm2, %v1885_v40, %v1904_v43 }
0x2503   :  { %4364 = vmatmul.mubr.msk.f32.vlgmr.msra.gmra.mrb[16].mxu1 %vm76_vm1, %v1906_v48 }
0x2504   :  { %4831 = vmatpush3.bf16.msra.mxu1 %v5197_v25  ;;  %4399 = vmatprep.mubr.msk.f32.mxu1 %vm5119_vm0, %v5118_v0 }
0x2505   :  { %4832 = vmatprep.subr.bf16.mxu1 %v5122_v24 }
0x2508   :  { %4834 = vmatpush3.bf16.msra.mxu1 %v5201_v27 }
0x2509   :  { %4835 = vmatprep.subr.bf16.mxu1 %v5122_v24 }
0x250c   :  { %4837 = vmatpush3.bf16.msra.mxu1 %v5206_v32 }
0x250d   :  { %4838 = vmatprep.subr.bf16.mxu1 %v5122_v24 }
0x2510   :  { %4840 = vmatpush3.bf16.msra.mxu1 %v5215_v35 }
0x2511   :  { %4841 = vmatprep.subr.bf16.mxu1 %v5122_v24 }
0x2514   :  { %4843 = vmatpush3.bf16.msra.mxu1 %v5221_v38 }
0x2515   :  { %4844 = vmatprep.subr.bf16.mxu1 %v5122_v24 }
0x2518   :  { %4846 = vmatpush3.bf16.msra.mxu1 %v5225_v41 }
0x2519   :  { %4847 = vmatprep.subr.bf16.mxu1 %v5122_v24 }
0x251c   :  { %4849 = vmatpush3.bf16.msra.mxu1 %v5230_v44 }
0x251d   :  { %4436 = vmatprep.subr.mxu1 %v5118_v0 }
0x25d6   :  { %v1979_v49 = vpop.f32.mrb[16].mxu1 }
0x25d7   :  { %v1983_v50 = vmul.f32 0.25, %v1979_v49  ;;  %v4365_v51 = vpop.f32.mrb[17].mxu1 }
0x25d9   :  { %v1984_v52 = vsel %vm154_vm3, %v1983_v50, -inf }
0x25da   :  { %1985 = vmax.xlane.f32.xlu0 %v1984_v52 }
0x2667   :  { %v1986_v53 = vpop.xlane.xlu0 %1985 }
0x2668   :  { %v1987_v57 = vsub.f32 %v1983_v50, %v1986_v53 }
0x266a   :  { %v1988_v55 = vmul.f32 1.442695, %v1987_v57 }
0x266c   :  { %5050 = vpow2.f32 %v1988_v55  ;;  %v2353_v55 = vld [vmem:[%s5993_s0 + $0x28] sm:$0xff] }
0x2676   :  { %v5051_v58 = vpop.eup %5050 }
0x2677   :  { %v1990_v30 = vsel %vm154_vm3, %v5051_v58, 0.0 }
0x2678   :  { %1991 = vadd.xlane.f32.xlu1 %v1990_v30 }
0x2705   :  { %v1992_v59 = vpop.xlane.xlu1 %1991 }
0x2706   :  { %5052 = vrcp.f32 %v1992_v59 }
0x2710   :  { %v5053_v60 = vpop.eup %5052 }
0x2711   :  { %v5599_v61 = vmul.f32 %v5053_v60, %v5051_v58 }
0x2713   :  { %4369 = vmatmul.mubr.msk.f32.vlgmr.msra.gmra.mrb[24].mxu0 %vm166_vm4, %v5599_v61 }
0x2714   :  { %4852 = vmatpush3.bf16.msra.mxu0 %v5264_v9  ;;  %4422 = vmatprep.mubr.msk.f32.mxu0 %vm5119_vm0, %v5118_v0 }
0x2715   :  { %4853 = vmatprep.subr.bf16.mxu0 %v5122_v24 }
0x2718   :  { %4855 = vmatpush3.bf16.msra.mxu0 %v5267_v11 }
0x2719   :  { %4856 = vmatprep.subr.bf16.mxu0 %v5122_v24 }
0x271c   :  { %4858 = vmatpush3.bf16.msra.mxu0 %v5272_v14 }
0x271d   :  { %4859 = vmatprep.subr.bf16.mxu0 %v5122_v24 }
0x2720   :  { %4861 = vmatpush3.bf16.msra.mxu0 %v5276_v18 }
0x2721   :  { %4862 = vmatprep.subr.bf16.mxu0 %v5122_v24 }
0x2724   :  { %4864 = vmatpush3.bf16.msra.mxu0 %v5281_v21 }
0x2725   :  { %4865 = vmatprep.subr.bf16.mxu0 %v5122_v24 }
0x27e6   :  { %v2064_v62 = vpop.f32.mrb[24].mxu0 }
0x27e7   :  { %v2069_v63 = vrot.slane %v2064_v62, 1  ;;  %v4370_v1 = vpop.f32.mrb[25].mxu0 }
0x27e9   :  { %2070 = vrot.lane.b32.xlu0 %v2069_v63, %s5121_s5 }
0x285b   :  { %v2071_v2 = vpop.permute.xlu0 %2070 }
0x285c   :  { %v2073_v6 = vsel %vm76_vm1, %v2064_v62, %v2071_v2 }
0x285d   :  { %2342 = vst.msk [vmem:[%s5996_s3 + $0x4] sm:$0x1] %vm528_vm6, %v2073_v6  ;;  %v2075_v7 = vrot.slane %v2073_v6, 4 }
0x285f   :  { %2076 = vrot.lane.b32.xlu1 %v2075_v7, %s5117_s23 }
0x2863   :  { %2085 = vrot.lane.b32.xlu1 %v1885_v40, %s5123_s8 }
0x28d1   :  { %v2077_v4 = vpop.permute.xlu1 %2076 }
0x28d2   :  { %v2079_v54 = vsel %vm166_vm4, %v5237_v47, %v2077_v4 }
0x28d3   :  { %v2081_v8 = vrot.slane %v2079_v54, 4 }
0x28d5   :  { %2082 = vrot.lane.b32.xlu0 %v2081_v8, %s5124_s11  ;;  %v2086_v12 = vpop.permute.xlu1 %2085 }
0x2947   :  { %v2083_v10 = vpop.permute.xlu0 %2082 }
0x2948   :  { %v2088_v13 = vsel %vm262_vm8, %v5556_v26, %v2083_v10 }
0x2949   :  { %v2089_v15 = vsel %vm264_vm9, %v2088_v13, %v2086_v12 }
0x294a   :  { %v2090_v16 = vsel %vm266_vm10, %v2089_v15, %v5254_v56 }
0x294b   :  { %4400 = vmatmul.mubr.msk.f32.vlgmr.msra.gmra.mrb[18].mxu1 %vm268_vm11, %v2090_v16 }
0x294c   :  { %4438 = vmatprep.mubr.msk.f32.mxu1 %vm5119_vm0, %v5118_v0  ;;  %4437 = vmatpush3.xpose.msk.msra.mxu1 %vm76_vm1, %v2353_v55 }
0x294d   :  { %4871 = vmatprep.subr.bf16.mxu1 %v5122_v24 }
0x2a1e   :  { %v2160_v19 = vpop.f32.mrb[18].mxu1 }
0x2a1f   :  { %2171 = vrot.lane.b32.xlu0 %v2160_v19, %s5124_s11  ;;  %v4401_v47 = vpop.f32.mrb[19].mxu1  ;;  %v3757_v20 = vmul.f32 -1.442695, %v2160_v19 }
0x2a21   :  { %5054 = vpow2.f32 %v3757_v20 }
0x2a2b   :  { %v5055_v28 = vpop.eup %5054 }
0x2a2c   :  { %v2167_v29 = vadd.f32 1.0, %v5055_v28 }
0x2a2e   :  { %5056 = vrcp.f32 %v2167_v29 }
0x2a38   :  { %v5057_v26 = vpop.eup %5056 }
0x2a39   :  { %v2181_v31 = vsub.f32 1.0, %v5057_v26  ;;  %v2187_v43 = vmul.f32 %v5057_v26, %v5552_v23 }
0x2a91   :  { %v2172_v3 = vpop.permute.xlu0 %2171 }
0x2a92   :  { %v2174_v33 = vmul.f32 %v5057_v26, %v2172_v3  ;;  %v5712_v3 = vld [vmem:[%s5993_s0 + $0x40] sm:$0xff] }
0x2a94   :  { %2176 = vrot.lane.b32.xlu1 %v2174_v33, %s5126_s2 }
0x2b06   :  { %v2177_v34 = vpop.permute.xlu1 %2176 }
0x2b07   :  { %v2179_v37 = vadd.f32 %v2177_v34, %v2160_v19 }
0x2b09   :  { %5058 = vtanh.f32 %v2179_v37 }
0x2b13   :  { %v5059_v40 = vpop.eup %5058 }
0x2b14   :  { %2183 = vrot.lane.b32.xlu0 %v5059_v40, %s5127_s15 }
0x2b86   :  { %v2184_v42 = vpop.permute.xlu0 %2183 }
0x2b87   :  { %v2186_v48 = vmul.f32 %v2184_v42, %v2181_v31 }
0x2b89   :  { %v5638_v49 = vadd.f32 %v2187_v43, %v2186_v48 }
0x2b8b   :  { %2190 = vrot.lane.b32.xlu1 %v5638_v49, %s5127_s15 }
0x2bfd   :  { %v5642_v50 = vpop.permute.xlu1 %2190 }
0x2bfe   :  { %v2193_v51 = vsel %vm262_vm8, %v5642_v50, %v2083_v10 }
0x2bff   :  { %v2194_v52 = vsel %vm264_vm9, %v2193_v51, %v5298_v39 }
0x2c00   :  { %4423 = vmatmul.mubr.msk.f32.vlgmr.msra.gmra.mrb[26].mxu0 %vm380_vm12, %v2194_v52 }
0x2c01   :  { %4867 = vmatpush3.bf16.msra.mxu0 %v5293_v36  ;;  %4433 = vmatprep.mubr.msk.f32.mxu0 %vm5119_vm0, %v5118_v0 }
0x2c02   :  { %4868 = vmatprep.subr.bf16.mxu0 %v5122_v24 }
0x2c05   :  { %4870 = vmatpush3.bf16.msra.mxu0 %v5307_v45 }
0x2c06   :  { %4441 = vmatprep.subr.mxu0 %v5118_v0 }
0x2cd3   :  { %v2264_v23 = vpop.f32.mrb[26].mxu0 }
0x2cd4   :  { %v2268_v53 = vmax.f32 %v2264_v23, 0.0  ;;  %v4424_v57 = vpop.f32.mrb[27].mxu0 }
0x2cd6   :  { %4434 = vmatmul.mubr.msk.f32.vlgmr.msra.gmra.mrb[28].mxu0 %vm262_vm8, %v2268_v53 }
0x2cd7   :  { %4443 = vmatprep.mubr.msk.f32.mxu0 %vm5119_vm0, %v5118_v0  ;;  %4442 = vmatpush3.msra.mxu0 %v2353_v55 }
0x2cd8   :  { %4892 = vmatprep.subr.bf16.mxu0 %v5122_v24 }
0x2da9   :  { %v2338_v58 = vpop.f32.mrb[28].mxu0 }
0x2daa   :  { %v2355_v30 = vrot.slane %v2338_v58, 7  ;;  %v4435_v59 = vpop.f32.mrb[29].mxu0 }
0x2dac   :  { %2356 = vrot.lane.b32.xlu0 %v2355_v30, %s5120_s29 }
0x2e1e   :  { %v2357_v60 = vpop.permute.xlu0 %2356 }
0x2e1f   :  { %v2359_v62 = vsel %vm74_vm2, %v2338_v58, %v2357_v60 }
0x2e20   :  { %4439 = vmatmul.mubr.msk.f32.vlgmr.msra.gmra.mrb[20].mxu1 %vm76_vm1, %v2359_v62 }
0x2e21   :  { %4873 = vmatpush3.bf16.msra.mxu1 %v5197_v25  ;;  %4474 = vmatprep.mubr.msk.f32.mxu1 %vm5119_vm0, %v5118_v0 }
0x2e22   :  { %4874 = vmatprep.subr.bf16.mxu1 %v5122_v24 }
0x2e25   :  { %4876 = vmatpush3.bf16.msra.mxu1 %v5201_v27 }
0x2e26   :  { %4877 = vmatprep.subr.bf16.mxu1 %v5122_v24 }
0x2e29   :  { %4879 = vmatpush3.bf16.msra.mxu1 %v5206_v32 }
0x2e2a   :  { %4880 = vmatprep.subr.bf16.mxu1 %v5122_v24 }
0x2e2d   :  { %4882 = vmatpush3.bf16.msra.mxu1 %v5215_v35 }
0x2e2e   :  { %4883 = vmatprep.subr.bf16.mxu1 %v5122_v24 }
0x2e31   :  { %4885 = vmatpush3.bf16.msra.mxu1 %v5221_v38 }
0x2e32   :  { %4886 = vmatprep.subr.bf16.mxu1 %v5122_v24 }
0x2e35   :  { %4888 = vmatpush3.bf16.msra.mxu1 %v5225_v41 }
0x2e36   :  { %4889 = vmatprep.subr.bf16.mxu1 %v5122_v24 }
0x2e39   :  { %4891 = vmatpush3.bf16.msra.mxu1 %v5230_v44 }
0x2e3a   :  { %4511 = vmatprep.subr.mxu1 %v5118_v0 }
0x2ef3   :  { %v2432_v63 = vpop.f32.mrb[20].mxu1 }
0x2ef4   :  { %v2436_v1 = vmul.f32 0.25, %v2432_v63  ;;  %v4440_v2 = vpop.f32.mrb[21].mxu1 }
0x2ef6   :  { %v2437_v6 = vsel %vm154_vm3, %v2436_v1, -inf }
0x2ef7   :  { %2438 = vmax.xlane.f32.xlu1 %v2437_v6 }
0x2f84   :  { %v2439_v7 = vpop.xlane.xlu1 %2438 }
0x2f85   :  { %v2440_v4 = vsub.f32 %v2436_v1, %v2439_v7 }
0x2f87   :  { %v2441_v54 = vmul.f32 1.442695, %v2440_v4 }
0x2f89   :  { %5060 = vpow2.f32 %v2441_v54 }
0x2f93   :  { %v5061_v8 = vpop.eup %5060 }
0x2f94   :  { %v2443_v10 = vsel %vm154_vm3, %v5061_v8, 0.0 }
0x2f95   :  { %2444 = vadd.xlane.f32.xlu0 %v2443_v10  ;;  %v2806_v10 = vld [vmem:[%s5993_s0 + $0x30] sm:$0xff] }
0x3022   :  { %v2445_v12 = vpop.xlane.xlu0 %2444 }
0x3023   :  { %5062 = vrcp.f32 %v2445_v12 }
0x302d   :  { %v5063_v13 = vpop.eup %5062 }
0x302e   :  { %v5685_v15 = vmul.f32 %v5063_v13, %v5061_v8 }
0x3030   :  { %4444 = vmatmul.mubr.msk.f32.vlgmr.msra.gmra.mrb[30].mxu0 %vm166_vm4, %v5685_v15 }
0x3031   :  { %4894 = vmatpush3.bf16.msra.mxu0 %v5264_v9  ;;  %4497 = vmatprep.mubr.msk.f32.mxu0 %vm5119_vm0, %v5118_v0 }
0x3032   :  { %4895 = vmatprep.subr.bf16.mxu0 %v5122_v24 }
0x3035   :  { %4897 = vmatpush3.bf16.msra.mxu0 %v5267_v11 }
0x3036   :  { %4898 = vmatprep.subr.bf16.mxu0 %v5122_v24 }
0x3039   :  { %4900 = vmatpush3.bf16.msra.mxu0 %v5272_v14 }
0x303a   :  { %4901 = vmatprep.subr.bf16.mxu0 %v5122_v24 }
0x303d   :  { %4903 = vmatpush3.bf16.msra.mxu0 %v5276_v18 }
0x303e   :  { %4904 = vmatprep.subr.bf16.mxu0 %v5122_v24 }
0x3041   :  { %4906 = vmatpush3.bf16.msra.mxu0 %v5281_v21 }
0x3042   :  { %4907 = vmatprep.subr.bf16.mxu0 %v5122_v24 }
0x3103   :  { %v2517_v16 = vpop.f32.mrb[30].mxu0 }
0x3104   :  { %v2522_v19 = vrot.slane %v2517_v16, 1  ;;  %v4445_v47 = vpop.f32.mrb[31].mxu0 }
0x3106   :  { %2523 = vrot.lane.b32.xlu0 %v2522_v19, %s5121_s5 }
0x310a   :  { %2538 = vrot.lane.b32.xlu0 %v2338_v58, %s5123_s8 }
0x3178   :  { %v2524_v20 = vpop.permute.xlu0 %2523 }
0x3179   :  { %v2526_v28 = vsel %vm76_vm1, %v2517_v16, %v2524_v20 }
0x317a   :  { %2795 = vst.msk [vmem:[%s5996_s3 + $0x5] sm:$0x1] %vm528_vm6, %v2526_v28  ;;  %v2528_v29 = vrot.slane %v2526_v28, 3 }
0x317c   :  { %2529 = vrot.lane.b32.xlu1 %v2528_v29, %s5117_s23  ;;  %v2539_v40 = vpop.permute.xlu0 %2538 }
0x31ee   :  { %v2530_v26 = vpop.permute.xlu1 %2529 }
0x31ef   :  { %v2532_v33 = vsel %vm166_vm4, %v5712_v3, %v2530_v26 }
0x31f0   :  { %v2534_v34 = vrot.slane %v2532_v33, 5 }
0x31f2   :  { %2535 = vrot.lane.b32.xlu1 %v2534_v34, %s5124_s11 }
0x3264   :  { %v2536_v37 = vpop.permute.xlu1 %2535 }
0x3265   :  { %v2541_v31 = vsel %vm262_vm8, %v5642_v50, %v2536_v37 }
0x3266   :  { %v2542_v42 = vsel %vm264_vm9, %v2541_v31, %v2539_v40 }
0x3267   :  { %v2543_v43 = vsel %vm266_vm10, %v2542_v42, %v5254_v56 }
0x3268   :  { %4475 = vmatmul.mubr.msk.f32.vlgmr.msra.gmra.mrb[22].mxu1 %vm268_vm11, %v2543_v43 }
0x3269   :  { %4513 = vmatprep.mubr.msk.f32.mxu1 %vm5119_vm0, %v5118_v0  ;;  %4512 = vmatpush3.xpose.msk.msra.mxu1 %vm76_vm1, %v2806_v10 }
0x326a   :  { %4913 = vmatprep.subr.bf16.mxu1 %v5122_v24 }
0x333b   :  { %v2613_v48 = vpop.f32.mrb[22].mxu1 }
0x333c   :  { %2624 = vrot.lane.b32.xlu1 %v2613_v48, %s5124_s11  ;;  %v4476_v51 = vpop.f32.mrb[23].mxu1  ;;  %v3764_v52 = vmul.f32 -1.442695, %v2613_v48 }
0x333e   :  { %5064 = vpow2.f32 %v3764_v52 }
0x3348   :  { %v5065_v23 = vpop.eup %5064 }
0x3349   :  { %v2620_v53 = vadd.f32 1.0, %v5065_v23 }
0x334b   :  { %5066 = vrcp.f32 %v2620_v53 }
0x3355   :  { %v5067_v50 = vpop.eup %5066 }
0x3356   :  { %v2634_v60 = vsub.f32 1.0, %v5067_v50  ;;  %v2640_v63 = vmul.f32 %v5067_v50, %v5638_v49 }
0x33ae   :  { %v2625_v57 = vpop.permute.xlu1 %2624 }
0x33af   :  { %v2627_v55 = vmul.f32 %v5067_v50, %v2625_v57 }
0x33b1   :  { %2629 = vrot.lane.b32.xlu0 %v2627_v55, %s5126_s2 }
0x3423   :  { %v2630_v58 = vpop.permute.xlu0 %2629 }
0x3424   :  { %v2632_v30 = vadd.f32 %v2630_v58, %v2613_v48 }
0x3426   :  { %5068 = vtanh.f32 %v2632_v30 }
0x3430   :  { %v5069_v59 = vpop.eup %5068 }
0x3431   :  { %2636 = vrot.lane.b32.xlu1 %v5069_v59, %s5127_s15 }
0x34a3   :  { %v2637_v62 = vpop.permute.xlu1 %2636 }
0x34a4   :  { %v2639_v1 = vmul.f32 %v2637_v62, %v2634_v60 }
0x34a6   :  { %v5729_v2 = vadd.f32 %v2640_v63, %v2639_v1 }
0x34a8   :  { %2643 = vrot.lane.b32.xlu0 %v5729_v2, %s5127_s15 }
0x351a   :  { %v5733_v6 = vpop.permute.xlu0 %2643 }
0x351b   :  { %v2646_v7 = vsel %vm262_vm8, %v5733_v6, %v2536_v37 }
0x351c   :  { %v2647_v4 = vsel %vm264_vm9, %v2646_v7, %v5298_v39 }
0x351d   :  { %4498 = vmatmul.mubr.msk.f32.vlgmr.msra.gmra.mrb[32].mxu0 %vm380_vm12, %v2647_v4 }
0x351e   :  { %4909 = vmatpush3.bf16.msra.mxu0 %v5293_v36  ;;  %4508 = vmatprep.mubr.msk.f32.mxu0 %vm5119_vm0, %v5118_v0 }
0x351f   :  { %4910 = vmatprep.subr.bf16.mxu0 %v5122_v24 }
0x3522   :  { %4912 = vmatpush3.bf16.msra.mxu0 %v5307_v45 }
0x3523   :  { %4516 = vmatprep.subr.mxu0 %v5118_v0 }
0x35f0   :  { %v2717_v49 = vpop.f32.mrb[32].mxu0 }
0x35f1   :  { %v2721_v54 = vmax.f32 %v2717_v49, 0.0  ;;  %v4499_v8 = vpop.f32.mrb[33].mxu0 }
0x35f3   :  { %4509 = vmatmul.mubr.msk.f32.vlgmr.msra.gmra.mrb[34].mxu0 %vm262_vm8, %v2721_v54 }
0x35f4   :  { %4518 = vmatprep.mubr.msk.f32.mxu0 %vm5119_vm0, %v5118_v0  ;;  %4517 = vmatpush3.msra.mxu0 %v2806_v10 }
0x35f5   :  { %4934 = vmatprep.subr.bf16.mxu0 %v5122_v24 }
0x36c6   :  { %v2791_v12 = vpop.f32.mrb[34].mxu0 }
0x36c7   :  { %v2808_v13 = vrot.slane %v2791_v12, 7  ;;  %v4510_v16 = vpop.f32.mrb[35].mxu0 }
0x36c9   :  { %2809 = vrot.lane.b32.xlu1 %v2808_v13, %s5120_s29 }
0x373b   :  { %v2810_v19 = vpop.permute.xlu1 %2809 }
0x373c   :  { %v2812_v47 = vsel %vm74_vm2, %v2791_v12, %v2810_v19 }
0x373d   :  { %4514 = vmatmul.mubr.msk.f32.vlgmr.msra.gmra.mrb[24].mxu1 %vm76_vm1, %v2812_v47 }
0x373e   :  { %4915 = vmatpush3.bf16.msra.mxu1 %v5197_v25  ;;  %4549 = vmatprep.mubr.msk.f32.mxu1 %vm5119_vm0, %v5118_v0 }
0x373f   :  { %4916 = vmatprep.subr.bf16.mxu1 %v5122_v24 }
0x3742   :  { %4918 = vmatpush3.bf16.msra.mxu1 %v5201_v27 }
0x3743   :  { %4919 = vmatprep.subr.bf16.mxu1 %v5122_v24 }
0x3746   :  { %4921 = vmatpush3.bf16.msra.mxu1 %v5206_v32 }
0x3747   :  { %4922 = vmatprep.subr.bf16.mxu1 %v5122_v24 }
0x374a   :  { %4924 = vmatpush3.bf16.msra.mxu1 %v5215_v35 }
0x374b   :  { %4925 = vmatprep.subr.bf16.mxu1 %v5122_v24 }
0x374e   :  { %4927 = vmatpush3.bf16.msra.mxu1 %v5221_v38 }
0x374f   :  { %4928 = vmatprep.subr.bf16.mxu1 %v5122_v24 }
0x3752   :  { %4930 = vmatpush3.bf16.msra.mxu1 %v5225_v41 }
0x3753   :  { %4931 = vmatprep.subr.bf16.mxu1 %v5122_v24 }
0x3756   :  { %4933 = vmatpush3.bf16.msra.mxu1 %v5230_v44 }
0x3757   :  { %4586 = vmatprep.subr.mxu1 %v5118_v0 }
0x3810   :  { %v2885_v20 = vpop.f32.mrb[24].mxu1 }
0x3811   :  { %v2889_v28 = vmul.f32 0.25, %v2885_v20  ;;  %v4515_v29 = vpop.f32.mrb[25].mxu1 }
0x3813   :  { %v2890_v26 = vsel %vm154_vm3, %v2889_v28, -inf }
0x3814   :  { %2891 = vmax.xlane.f32.xlu0 %v2890_v26 }
0x38a1   :  { %v2892_v33 = vpop.xlane.xlu0 %2891 }
0x38a2   :  { %v2893_v34 = vsub.f32 %v2889_v28, %v2892_v33 }
0x38a4   :  { %v2894_v37 = vmul.f32 1.442695, %v2893_v34 }
0x38a6   :  { %5070 = vpow2.f32 %v2894_v37 }
0x38b0   :  { %v5071_v40 = vpop.eup %5070 }
0x38b1   :  { %v2896_v31 = vsel %vm154_vm3, %v5071_v40, 0.0 }
0x38b2   :  { %2897 = vadd.xlane.f32.xlu1 %v2896_v31 }
0x393f   :  { %v2898_v42 = vpop.xlane.xlu1 %2897 }
0x3940   :  { %5072 = vrcp.f32 %v2898_v42  ;;  %v3259_v42 = vld [vmem:[%s5993_s0 + $0x38] sm:$0xff] }
0x394a   :  { %v5073_v43 = vpop.eup %5072 }
0x394b   :  { %v5776_v48 = vmul.f32 %v5073_v43, %v5071_v40 }
0x394d   :  { %4519 = vmatmul.mubr.msk.f32.vlgmr.msra.gmra.mrb[36].mxu0 %vm166_vm4, %v5776_v48 }
0x394e   :  { %4936 = vmatpush3.bf16.msra.mxu0 %v5264_v9  ;;  %4572 = vmatprep.mubr.msk.f32.mxu0 %vm5119_vm0, %v5118_v0 }
0x394f   :  { %4937 = vmatprep.subr.bf16.mxu0 %v5122_v24 }
0x3952   :  { %4939 = vmatpush3.bf16.msra.mxu0 %v5267_v11 }
0x3953   :  { %4940 = vmatprep.subr.bf16.mxu0 %v5122_v24 }
0x3956   :  { %4942 = vmatpush3.bf16.msra.mxu0 %v5272_v14 }
0x3957   :  { %4943 = vmatprep.subr.bf16.mxu0 %v5122_v24 }
0x395a   :  { %4945 = vmatpush3.bf16.msra.mxu0 %v5276_v18 }
0x395b   :  { %4946 = vmatprep.subr.bf16.mxu0 %v5122_v24 }
0x395e   :  { %4948 = vmatpush3.bf16.msra.mxu0 %v5281_v21 }
0x395f   :  { %4949 = vmatprep.subr.bf16.mxu0 %v5122_v24 }
0x3a20   :  { %v2970_v51 = vpop.f32.mrb[36].mxu0 }
0x3a21   :  { %v2975_v52 = vrot.slane %v2970_v51, 1  ;;  %v4520_v23 = vpop.f32.mrb[37].mxu0 }
0x3a23   :  { %2976 = vrot.lane.b32.xlu0 %v2975_v52, %s5121_s5 }
0x3a95   :  { %v2977_v53 = vpop.permute.xlu0 %2976 }
0x3a96   :  { %v2979_v50 = vsel %vm76_vm1, %v2970_v51, %v2977_v53 }
0x3a97   :  { %3248 = vst.msk [vmem:[%s5996_s3 + $0x6] sm:$0x1] %vm528_vm6, %v2979_v50  ;;  %v2981_v57 = vrot.slane %v2979_v50, 2 }
0x3a99   :  { %2982 = vrot.lane.b32.xlu1 %v2981_v57, %s5117_s23 }
0x3a9d   :  { %2991 = vrot.lane.b32.xlu1 %v2791_v12, %s5123_s8 }
0x3b0b   :  { %v2983_v55 = vpop.permute.xlu1 %2982 }
0x3b0c   :  { %v2985_v58 = vsel %vm166_vm4, %v5712_v3, %v2983_v55 }
0x3b0d   :  { %v2987_v30 = vrot.slane %v2985_v58, 6 }
0x3b0f   :  { %2988 = vrot.lane.b32.xlu0 %v2987_v30, %s5124_s11  ;;  %v2992_v60 = vpop.permute.xlu1 %2991 }
0x3b81   :  { %v2989_v59 = vpop.permute.xlu0 %2988 }
0x3b82   :  { %v2994_v62 = vsel %vm262_vm8, %v5733_v6, %v2989_v59 }
0x3b83   :  { %v2995_v63 = vsel %vm264_vm9, %v2994_v62, %v2992_v60 }
0x3b84   :  { %v2996_v1 = vsel %vm266_vm10, %v2995_v63, %v5254_v56 }
0x3b85   :  { %4550 = vmatmul.mubr.msk.f32.vlgmr.msra.gmra.mrb[26].mxu1 %vm268_vm11, %v2996_v1 }
0x3b86   :  { %4588 = vmatprep.mubr.msk.f32.mxu1 %vm5119_vm0, %v5118_v0  ;;  %4587 = vmatpush3.xpose.msk.msra.mxu1 %vm76_vm1, %v3259_v42 }
0x3b87   :  { %4955 = vmatprep.subr.bf16.mxu1 %v5122_v24 }
0x3c58   :  { %v3066_v7 = vpop.f32.mrb[26].mxu1 }
0x3c59   :  { %3077 = vrot.lane.b32.xlu0 %v3066_v7, %s5124_s11  ;;  %v4551_v4 = vpop.f32.mrb[27].mxu1  ;;  %v3771_v49 = vmul.f32 -1.442695, %v3066_v7 }
0x3c5b   :  { %5074 = vpow2.f32 %v3771_v49 }
0x3c65   :  { %v5075_v54 = vpop.eup %5074 }
0x3c66   :  { %v3073_v8 = vadd.f32 1.0, %v5075_v54 }
0x3c68   :  { %5076 = vrcp.f32 %v3073_v8 }
0x3c72   :  { %v5077_v6 = vpop.eup %5076 }
0x3c73   :  { %v3087_v47 = vsub.f32 1.0, %v5077_v6  ;;  %v3093_v28 = vmul.f32 %v5077_v6, %v5729_v2 }
0x3ccb   :  { %v3078_v10 = vpop.permute.xlu0 %3077 }
0x3ccc   :  { %v3080_v12 = vmul.f32 %v5077_v6, %v3078_v10 }
0x3cce   :  { %3082 = vrot.lane.b32.xlu1 %v3080_v12, %s5126_s2 }
0x3d40   :  { %v3083_v13 = vpop.permute.xlu1 %3082 }
0x3d41   :  { %v3085_v16 = vadd.f32 %v3083_v13, %v3066_v7 }
0x3d43   :  { %5078 = vtanh.f32 %v3085_v16 }
0x3d4d   :  { %v5079_v19 = vpop.eup %5078 }
0x3d4e   :  { %3089 = vrot.lane.b32.xlu0 %v5079_v19, %s5127_s15 }
0x3dc0   :  { %v3090_v20 = vpop.permute.xlu0 %3089 }
0x3dc1   :  { %v3092_v29 = vmul.f32 %v3090_v20, %v3087_v47 }
0x3dc3   :  { %v5815_v26 = vadd.f32 %v3093_v28, %v3092_v29  ;;  %v530_v28 = vrot.slane %v5185_v17, 1  ;;  %v1437_v29 = vrot.slane %v5427_v22, 1 }
0x3dc5   :  { %3096 = vrot.lane.b32.xlu1 %v5815_v26, %s5127_s15 }
0x3e37   :  { %v5819_v33 = vpop.permute.xlu1 %3096 }
0x3e38   :  { %v3099_v34 = vsel %vm262_vm8, %v5819_v33, %v2989_v59 }
0x3e39   :  { %v3100_v37 = vsel %vm264_vm9, %v3099_v34, %v5298_v39  ;;  %v3249_v34 = vrot.slane %v5776_v48, 1 }
0x3e3a   :  { %4573 = vmatmul.mubr.msk.f32.vlgmr.msra.gmra.mrb[38].mxu0 %vm380_vm12, %v3100_v37 }
0x3e3b   :  { %4951 = vmatpush3.bf16.msra.mxu0 %v5293_v36  ;;  %4583 = vmatprep.mubr.msk.f32.mxu0 %vm5119_vm0, %v5118_v0 }
0x3e3c   :  { %4952 = vmatprep.subr.bf16.mxu0 %v5122_v24 }
0x3e3f   :  { %4954 = vmatpush3.bf16.msra.mxu0 %v5307_v45 }
0x3e40   :  { %4591 = vmatprep.subr.mxu0 %v5118_v0 }
0x3f0d   :  { %v3170_v2 = vpop.f32.mrb[38].mxu0 }
0x3f0e   :  { %v3174_v40 = vmax.f32 %v3170_v2, 0.0  ;;  %v4574_v31 = vpop.f32.mrb[39].mxu0 }
0x3f10   :  { %4584 = vmatmul.mubr.msk.f32.vlgmr.msra.gmra.mrb[40].mxu0 %vm262_vm8, %v3174_v40 }
0x3f11   :  { %4593 = vmatprep.mubr.msk.f32.mxu0 %vm5119_vm0, %v5118_v0  ;;  %4592 = vmatpush3.msra.mxu0 %v3259_v42 }
0x3f12   :  { %4976 = vmatprep.subr.bf16.mxu0 %v5122_v24 }
0x3fe3   :  { %v3244_v43 = vpop.f32.mrb[40].mxu0 }
0x3fe4   :  { %v3261_v51 = vrot.slane %v3244_v43, 7  ;;  %v4585_v52 = vpop.f32.mrb[41].mxu0 }
0x3fe5   :  { %v984_v52 = vrot.slane %v5341_v5, 1 }
0x3fe6   :  { %3262 = vrot.lane.b32.xlu0 %v3261_v51, %s5120_s29 }
0x4058   :  { %v3263_v23 = vpop.permute.xlu0 %3262 }
0x4059   :  { %v3265_v53 = vsel %vm74_vm2, %v3244_v43, %v3263_v23 }
0x405a   :  { %4589 = vmatmul.mubr.msk.f32.vlgmr.msra.gmra.mrb[28].mxu1 %vm76_vm1, %v3265_v53 }
0x405b   :  { %4957 = vmatpush3.bf16.msra.mxu1 %v5197_v25  ;;  %4624 = vmatprep.mubr.msk.f32.mxu1 %vm5119_vm0, %v5118_v0 }
0x405c   :  { %4958 = vmatprep.subr.bf16.mxu1 %v5122_v24 }
0x405f   :  { %4960 = vmatpush3.bf16.msra.mxu1 %v5201_v27 }
0x4060   :  { %4961 = vmatprep.subr.bf16.mxu1 %v5122_v24 }
0x4063   :  { %4963 = vmatpush3.bf16.msra.mxu1 %v5206_v32 }
0x4064   :  { %4964 = vmatprep.subr.bf16.mxu1 %v5122_v24 }
0x4067   :  { %4966 = vmatpush3.bf16.msra.mxu1 %v5215_v35 }
0x4068   :  { %4967 = vmatprep.subr.bf16.mxu1 %v5122_v24 }
0x406b   :  { %4969 = vmatpush3.bf16.msra.mxu1 %v5221_v38 }
0x406c   :  { %4970 = vmatprep.subr.bf16.mxu1 %v5122_v24 }
0x406f   :  { %4972 = vmatpush3.bf16.msra.mxu1 %v5225_v41 }
0x4070   :  { %4973 = vmatprep.subr.bf16.mxu1 %v5122_v24 }
0x4073   :  { %4975 = vmatpush3.bf16.msra.mxu1 %v5230_v44 }
0x412d   :  { %v3338_v25 = vpop.f32.mrb[28].mxu1 }
0x412e   :  { %v3342_v27 = vmul.f32 0.25, %v3338_v25  ;;  %v4590_v50 = vpop.f32.mrb[29].mxu1 }
0x4130   :  { %v3343_v32 = vsel %vm154_vm3, %v3342_v27, -inf }
0x4131   :  { %3344 = vmax.xlane.f32.xlu1 %v3343_v32 }
0x41be   :  { %v3345_v57 = vpop.xlane.xlu1 %3344 }
0x41bf   :  { %v3346_v35 = vsub.f32 %v3342_v27, %v3345_v57  ;;  %v2796_v27 = vrot.slane %v5685_v15, 1 }
0x41c1   :  { %v3347_v55 = vmul.f32 1.442695, %v3346_v35 }
0x41c3   :  { %5080 = vpow2.f32 %v3347_v55 }
0x41cd   :  { %v5081_v58 = vpop.eup %5080 }
0x41ce   :  { %v3349_v38 = vsel %vm154_vm3, %v5081_v58, 0.0 }
0x41cf   :  { %3350 = vadd.xlane.f32.xlu0 %v3349_v38 }
0x425c   :  { %v3351_v30 = vpop.xlane.xlu0 %3350 }
0x425d   :  { %5082 = vrcp.f32 %v3351_v30 }
0x4267   :  { %v5083_v41 = vpop.eup %5082 }
0x4268   :  { %v5861_v59 = vmul.f32 %v5083_v41, %v5081_v58 }
0x426a   :  { %4594 = vmatmul.mubr.msk.f32.vlgmr.msra.gmra.mrb[42].mxu0 %vm166_vm4, %v5861_v59  ;;  %v3702_v32 = vrot.slane %v5861_v59, 1 }
0x426b   :  { %4978 = vmatpush3.bf16.msra.mxu0 %v5264_v9  ;;  %4647 = vmatprep.mubr.msk.f32.mxu0 %vm5119_vm0, %v5118_v0 }
0x426c   :  { %4979 = vmatprep.subr.bf16.mxu0 %v5122_v24 }
0x426f   :  { %4981 = vmatpush3.bf16.msra.mxu0 %v5267_v11 }
0x4270   :  { %4982 = vmatprep.subr.bf16.mxu0 %v5122_v24 }
0x4273   :  { %4984 = vmatpush3.bf16.msra.mxu0 %v5272_v14 }
0x4274   :  { %4985 = vmatprep.subr.bf16.mxu0 %v5122_v24 }
0x4277   :  { %4987 = vmatpush3.bf16.msra.mxu0 %v5276_v18 }
0x4278   :  { %4988 = vmatprep.subr.bf16.mxu0 %v5122_v24 }
0x427b   :  { %4990 = vmatpush3.bf16.msra.mxu0 %v5281_v21 }
0x427c   :  { %4991 = vmatprep.subr.bf16.mxu0 %v5122_v24 }
0x433d   :  { %v3423_v44 = vpop.f32.mrb[42].mxu0 }
0x433e   :  { %v3428_v9 = vrot.slane %v3423_v44, 1  ;;  %v4595_v60 = vpop.f32.mrb[43].mxu0 }
0x4340   :  { %3429 = vrot.lane.b32.xlu0 %v3428_v9, %s5121_s5 }
0x4344   :  { %3444 = vrot.lane.b32.xlu0 %v3244_v43, %s5123_s8 }
0x43b2   :  { %v3430_v11 = vpop.permute.xlu0 %3429 }
0x43b3   :  { %v3432_v14 = vsel %vm76_vm1, %v3423_v44, %v3430_v11 }
0x43b4   :  { %3701 = vst.msk [vmem:[%s5996_s3 + $0x7] sm:$0x1] %vm528_vm6, %v3432_v14  ;;  %v3434_v18 = vrot.slane %v3432_v14, 1 }
0x43b6   :  { %3435 = vrot.lane.b32.xlu1 %v3434_v18, %s5117_s23  ;;  %v3445_v7 = vpop.permute.xlu0 %3444 }
0x4428   :  { %v3436_v21 = vpop.permute.xlu1 %3435 }
0x4429   :  { %v3438_v62 = vsel %vm166_vm4, %v5712_v3, %v3436_v21 }
0x442a   :  { %v3440_v63 = vrot.slane %v3438_v62, 7 }
0x442c   :  { %3441 = vrot.lane.b32.xlu1 %v3440_v63, %s5124_s11 }
0x449e   :  { %v3442_v1 = vpop.permute.xlu1 %3441 }
0x449f   :  { %v3447_v4 = vsel %vm262_vm8, %v5819_v33, %v3442_v1  ;;  %v2343_v33 = vrot.slane %v5599_v61, 1 }
0x44a0   :  { %v3448_v49 = vsel %vm264_vm9, %v3447_v4, %v3445_v7 }
0x44a1   :  { %v3449_v54 = vsel %vm266_vm10, %v3448_v49, %v5254_v56 }
0x44a2   :  { %4625 = vmatmul.mubr.msk.f32.vlgmr.msra.gmra.mrb[30].mxu1 %vm268_vm11, %v3449_v54 }
0x4575   :  { %v3519_v8 = vpop.f32.mrb[30].mxu1 }
0x4576   :  { %3530 = vrot.lane.b32.xlu1 %v3519_v8, %s5124_s11  ;;  %v4626_v6 = vpop.f32.mrb[31].mxu1  ;;  %v3778_v3 = vmul.f32 -1.442695, %v3519_v8 }
0x4578   :  { %5084 = vpow2.f32 %v3778_v3 }
0x4582   :  { %v5085_v10 = vpop.eup %5084 }
0x4583   :  { %v3526_v12 = vadd.f32 1.0, %v5085_v10 }
0x4585   :  { %5086 = vrcp.f32 %v3526_v12 }
0x458f   :  { %v5087_v13 = vpop.eup %5086 }
0x4590   :  { %v3540_v37 = vsub.f32 1.0, %v5087_v13  ;;  %v3546_v40 = vmul.f32 %v5087_v13, %v5815_v26  ;;  %v1890_v26 = vrot.slane %v5513_v46, 1 }
0x45e8   :  { %v3531_v16 = vpop.permute.xlu1 %3530 }
0x45e9   :  { %v3533_v19 = vmul.f32 %v5087_v13, %v3531_v16 }
0x45eb   :  { %3535 = vrot.lane.b32.xlu0 %v3533_v19, %s5126_s2 }
0x465d   :  { %v3536_v47 = vpop.permute.xlu0 %3535 }
0x465e   :  { %v3538_v20 = vadd.f32 %v3536_v47, %v3519_v8 }
0x4660   :  { %5088 = vtanh.f32 %v3538_v20 }
0x466a   :  { %v5089_v56 = vpop.eup %5088 }
0x466b   :  { %3542 = vrot.lane.b32.xlu1 %v5089_v56, %s5127_s15 }
0x466f   :  { %531 = vrot.lane.b32.xlu1 %v530_v28, %s5117_s23 }
0x4673   :  { %1438 = vrot.lane.b32.xlu1 %v1437_v29, %s5117_s23 }
0x4677   :  { %2344 = vrot.lane.b32.xlu1 %v2343_v33, %s5117_s23 }
0x467b   :  { %3250 = vrot.lane.b32.xlu1 %v3249_v34, %s5117_s23 }
0x46dd   :  { %v3543_v2 = vpop.permute.xlu1 %3542 }
0x46de   :  { %v3545_v31 = vmul.f32 %v3543_v2, %v3540_v37 }
0x46e0   :  { %v3547_v42 = vadd.f32 %v3546_v40, %v3545_v31 }
0x46e1   :  { %v532_v43 = vpop.permute.xlu1 %531 }
0x46e2   :  { %v534_v51 = vsel %vm166_vm4, %v5185_v17, %v532_v43  ;;  %3549 = vrot.lane.b32.xlu0 %v3547_v42, %s5127_s15 }
0x46e3   :  { %536 = vrot.lane.b32.xlu1 %v534_v51, %s5124_s11 }
0x46e5   :  { %v1439_v23 = vpop.permute.xlu1 %1438 }
0x46e6   :  { %v1441_v53 = vsel %vm166_vm4, %v5427_v22, %v1439_v23  ;;  %985 = vrot.lane.b32.xlu0 %v984_v52, %s5117_s23 }
0x46e7   :  { %1443 = vrot.lane.b32.xlu1 %v1441_v53, %s5124_s11 }
0x46e9   :  { %v2345_v25 = vpop.permute.xlu1 %2344 }
0x46ea   :  { %v2347_v17 = vsel %vm166_vm4, %v5599_v61, %v2345_v25  ;;  %1891 = vrot.lane.b32.xlu0 %v1890_v26, %s5117_s23 }
0x46eb   :  { %2349 = vrot.lane.b32.xlu1 %v2347_v17, %s5124_s11 }
0x46ed   :  { %v3251_v50 = vpop.permute.xlu1 %3250 }
0x46ee   :  { %v3253_v22 = vsel %vm166_vm4, %v5776_v48, %v3251_v50  ;;  %2797 = vrot.lane.b32.xlu0 %v2796_v27, %s5117_s23 }
0x46ef   :  { %3255 = vrot.lane.b32.xlu1 %v3253_v22, %s5124_s11 }
0x46f2   :  { %3703 = vrot.lane.b32.xlu0 %v3702_v32, %s5117_s23 }
0x4754   :  { %v3550_v61 = vpop.permute.xlu0 %3549 }
0x4755   :  { %v3552_v57 = vsel %vm262_vm8, %v3550_v61, %v3442_v1  ;;  %3712 = vst.msk [vmem:[%s5996_s3 + $0x8] sm:$0x1] %vm528_vm6, %v3550_v61  ;;  %v537_v35 = vpop.permute.xlu1 %536 }
0x4756   :  { %v3553_v48 = vsel %vm264_vm9, %v3552_v57, %v5298_v39  ;;  %540 = vst.msk [vmem:[%s5996_s3] sm:$0x1] %vm539_vm14, %v537_v35 }
0x4757   :  { %4648 = vmatmul.mubr.msk.f32.vlgmr.msra.gmra.mrb[44].mxu0 %vm380_vm12, %v3553_v48 }
0x4758   :  { %v986_v55 = vpop.permute.xlu0 %985  ;;  %4993 = vmatpush3.bf16.msra.mxu0 %v5293_v36  ;;  %4658 = vmatprep.mubr.msk.f32.mxu0 %vm5119_vm0, %v5118_v0 }
0x4759   :  { %v1444_v58 = vpop.permute.xlu1 %1443  ;;  %v988_v38 = vsel %vm166_vm4, %v5341_v5, %v986_v55  ;;  %4994 = vmatprep.subr.bf16.mxu0 %v5122_v24 }
0x475a   :  { %1446 = vst.msk [vmem:[%s5996_s3 + $0x2] sm:$0x1] %vm539_vm14, %v1444_v58  ;;  %990 = vrot.lane.b32.xlu0 %v988_v38, %s5124_s11 }
0x475c   :  { %v1892_v39 = vpop.permute.xlu0 %1891  ;;  %4996 = vmatpush3.bf16.msra.mxu0 %v5307_v45 }
0x475d   :  { %v2350_v36 = vpop.permute.xlu1 %2349  ;;  %v1894_v0 = vsel %vm166_vm4, %v5513_v46, %v1892_v39 }
0x475e   :  { %2352 = vst.msk [vmem:[%s5996_s3 + $0x4] sm:$0x1] %vm539_vm14, %v2350_v36  ;;  %1896 = vrot.lane.b32.xlu0 %v1894_v0, %s5124_s11 }
0x4760   :  { %v2798_v24 = vpop.permute.xlu0 %2797 }
0x4761   :  { %v3256_v5 = vpop.permute.xlu1 %3255  ;;  %v2800_v30 = vsel %vm166_vm4, %v5685_v15, %v2798_v24 }
0x4762   :  { %3258 = vst.msk [vmem:[%s5996_s3 + $0x6] sm:$0x1] %vm539_vm14, %v3256_v5  ;;  %2802 = vrot.lane.b32.xlu0 %v2800_v30, %s5124_s11 }
0x4764   :  { %v3704_v45 = vpop.permute.xlu0 %3703 }
0x4765   :  { %v3706_v46 = vsel %vm166_vm4, %v5861_v59, %v3704_v45 }
0x4766   :  { %3708 = vrot.lane.b32.xlu0 %v3706_v46, %s5124_s11 }
0x47cc   :  { %v991_v41 = vpop.permute.xlu0 %990 }
0x47cd   :  { %993 = vst.msk [vmem:[%s5996_s3 + $0x1] sm:$0x1] %vm539_vm14, %v991_v41 }
0x47d0   :  { %v1897_v15 = vpop.permute.xlu0 %1896 }
0x47d1   :  { %1899 = vst.msk [vmem:[%s5996_s3 + $0x3] sm:$0x1] %vm539_vm14, %v1897_v15 }
0x47d4   :  { %v2803_v44 = vpop.permute.xlu0 %2802 }
0x47d5   :  { %2805 = vst.msk [vmem:[%s5996_s3 + $0x5] sm:$0x1] %vm539_vm14, %v2803_v44 }
0x47d8   :  { %v3709_v59 = vpop.permute.xlu0 %3708 }
0x47d9   :  { %3711 = vst.msk [vmem:[%s5996_s3 + $0x7] sm:$0x1] %vm539_vm14, %v3709_v59 }
0x482a   :  { %v3623_v9 = vpop.f32.mrb[44].mxu0 }
0x482b   :  { %v3627_v60 = vmax.f32 %v3623_v9, 0.0  ;;  %v4649_v11 = vpop.f32.mrb[45].mxu0 }
0x482d   :  { %4659 = vmatmul.mubr.msk.f32.vlgmr.msra.gmra.mrb[46].mxu0 %vm262_vm8, %v3627_v60 }
0x4900   :  { %v3697_v14 = vpop.f32.mrb[46].mxu0 }
0x4901   :  { %v4660_v18 = vpop.f32.mrb[47].mxu0  ;;  %3714 = vrot.lane.b32.xlu1 %v3697_v14, %s5124_s11 }
0x4973   :  { %v3715_v21 = vpop.permute.xlu1 %3714 }
0x4974   :  { %3718 = vst.msk [vmem:[%s5996_s3 + $0x8] sm:$0x1] %vm3717_vm15, %v3715_v21 }
0x4975   :  { %3723 = vsyncpa [#allocation3], 1 }

</bundles_post_ra>
